<compile_context>
chip_gen: v7x
topology: tpu7x:2x2x1
jax: 0.10.0
libtpu: 0.0.40
codegen_flags: <defaults>
</compile_context>

<pallas_src>
import math
import numpy as np
import jax
import jax.numpy as jnp
from jax.experimental import pallas as pl
from jax.experimental.pallas import tpu as pltpu

# ------------------------- module hyper-parameters -------------------------
SAMPLE_RATE = 16000
WIN_LENGTH = 320           # n_window_size
HOP_LENGTH = 160           # n_window_stride
N_MELS = 64                # nfilt
# n_fft=None in the module; NeMo/torchaudio resolve it to next pow2 of win_length.
N_FFT = 512
N_FREQS = 256              # rfft bins 0..255; bin 256 (Nyquist) has zero mel weight
PREEMPH = 0.97
LOG_GUARD = 2.0 ** (-24)   # log_zero_guard_value, type 'add'
NORM_EPS = 1e-5            # normalization eps ('per_feature')
F_MIN = 0.0
F_MAX = SAMPLE_RATE / 2.0  # highfreq=None -> sr/2


# --------------------- deterministic parameter synthesis -------------------
def _hann_window_padded(win_length: int, n_fft: int) -> np.ndarray:
    # torch.hann_window(win_length, periodic=False): module passes wkwargs={'periodic': False}
    n = np.arange(win_length, dtype=np.float64)
    w = 0.5 - 0.5 * np.cos(2.0 * np.pi * n / (win_length - 1))
    # torch.stft pads the window symmetrically to n_fft
    left = (n_fft - win_length) // 2
    right = n_fft - win_length - left
    return np.pad(w, (left, right))                       # float64, (n_fft,)


def _hz_to_mel_slaney(freq: float) -> float:
    f_sp = 200.0 / 3.0
    mels = freq / f_sp
    min_log_hz = 1000.0
    min_log_mel = min_log_hz / f_sp
    logstep = math.log(6.4) / 27.0
    if freq >= min_log_hz:
        mels = min_log_mel + math.log(freq / min_log_hz) / logstep
    return mels


def _mel_to_hz_slaney(mels: np.ndarray) -> np.ndarray:
    f_sp = 200.0 / 3.0
    freqs = f_sp * mels
    min_log_hz = 1000.0
    min_log_mel = min_log_hz / f_sp
    logstep = math.log(6.4) / 27.0
    return np.where(
        mels >= min_log_mel,
        min_log_hz * np.exp(logstep * (mels - min_log_mel)),
        freqs,
    )


def _melscale_fbanks(n_freqs: int, f_min: float, f_max: float, n_mels: int,
                     sample_rate: int) -> np.ndarray:
    # torchaudio.functional.melscale_fbanks(mel_scale='slaney', norm='slaney')
    all_freqs = np.linspace(0.0, sample_rate // 2, n_freqs)
    m_min = _hz_to_mel_slaney(f_min)
    m_max = _hz_to_mel_slaney(f_max)
    m_pts = np.linspace(m_min, m_max, n_mels + 2)
    f_pts = _mel_to_hz_slaney(m_pts)
    f_diff = f_pts[1:] - f_pts[:-1]
    slopes = f_pts[None, :] - all_freqs[:, None]            # (n_freqs, n_mels+2)
    down = -slopes[:, :-2] / f_diff[:-1]
    up = slopes[:, 2:] / f_diff[1:]
    fb = np.maximum(0.0, np.minimum(down, up))
    enorm = 2.0 / (f_pts[2:n_mels + 2] - f_pts[:n_mels])    # slaney norm
    fb = fb * enorm[None, :]
    return fb                                               # float64, (n_freqs, n_mels)


def _fused_windowed_dft_t(n_fft: int, n_freqs: int, window: np.ndarray) -> np.ndarray:
    # Rows 0..n_freqs-1: w[k]*cos(2*pi*k*f/n_fft); rows n_freqs..2*n_freqs-1: w[k]*sin(...)
    k = np.arange(n_fft, dtype=np.float64)[None, :]
    f = np.arange(n_freqs, dtype=np.float64)[:, None]
    ang = 2.0 * np.pi * k * f / n_fft
    wt = np.concatenate([np.cos(ang), np.sin(ang)], axis=0) * window[None, :]
    return wt                                                # float64, (2*n_freqs, n_fft)


_WINDOW_NP = _hann_window_padded(WIN_LENGTH, N_FFT)
# bf16 MXU operands (accuracy: ~3 significant digits on the power spectrum; validate
# against PyTorch with a realistic post-log tolerance).
_WT = jnp.asarray(_fused_windowed_dft_t(N_FFT, N_FREQS, _WINDOW_NP),
                  dtype=jnp.bfloat16)                                       # (512, 512)

_FB_FULL = _melscale_fbanks(N_FFT // 2 + 1, F_MIN, F_MAX, N_MELS, SAMPLE_RATE)
# Dropping the Nyquist bin is exact only because its mel weight is zero with f_max=sr/2.
assert float(np.abs(_FB_FULL[-1]).max()) < 1e-6
_FBT = jnp.asarray(np.ascontiguousarray(_FB_FULL[:N_FREQS].T),
                   dtype=jnp.bfloat16)                                      # (64, 256)


# -------------------------------- kernel -----------------------------------
def _melspec_kernel(featlen_ref,            # SMEM (B,) int32   (scalar prefetch)
                    chunks_ref,             # VMEM (1, n_chunks, hop) f32
                    wt_ref,                 # VMEM (2*n_freqs, n_fft) bf16 (window folded in)
                    fbt_ref,                # VMEM (n_mels, n_freqs)  bf16
                    out_ref,                # VMEM (1, n_mels, t_pad) f32
                    frames_ref):            # VMEM scratch (n_fft, t_pad) bf16
    b = pl.program_id(0)
    t_pad = out_ref.shape[2]

    # ---- in-kernel transpose of the hop-chunk tile (XLU; hidden under the MXU matmul):
    # chunks[c, k] = padded[c*hop + k]  ->  chT[k, c]
    chT = jnp.transpose(chunks_ref[0], (1, 0))               # (hop, n_chunks) f32

    # ---- framing in VMEM: frame[k, t] = padded[t*hop + k]; n_fft = 3*hop + 32, so frame
    # t is chunk columns t, t+1, t+2 plus the first 32 samples of column t+3.
    # Stored as bf16 (MXU operand); no HBM duplication of the frames.
    frames_ref[0:HOP_LENGTH, :] = chT[:, 0:t_pad].astype(jnp.bfloat16)
    frames_ref[HOP_LENGTH:2 * HOP_LENGTH, :] = chT[:, 1:1 + t_pad].astype(jnp.bfloat16)
    frames_ref[2 * HOP_LENGTH:3 * HOP_LENGTH, :] = chT[:, 2:2 + t_pad].astype(jnp.bfloat16)
    frames_ref[3 * HOP_LENGTH:N_FFT, :] = (
        chT[0:N_FFT - 3 * HOP_LENGTH, 3:3 + t_pad].astype(jnp.bfloat16))

    # ---- windowed one-sided DFT: one bf16 MXU matmul, f32 accumulation.
    y = jnp.dot(wt_ref[...], frames_ref[...], preferred_element_type=jnp.float32)
    re = y[0:N_FREQS, :]
    im = y[N_FREQS:2 * N_FREQS, :]
    power = re * re + im * im                                 # (n_freqs, T) f32

    # ---- mel projection (bf16 MXU) + log (zero-guard 'add')
    mel = jnp.dot(fbt_ref[...], power.astype(jnp.bfloat16),
                  preferred_element_type=jnp.float32)         # (n_mels, T) f32
    feats = jnp.log(mel + LOG_GUARD)

    # ---- masked per_feature normalization (time along lanes), all f32.
    flen = featlen_ref[b]
    t_idx = jax.lax.broadcasted_iota(jnp.int32, (N_MELS, t_pad), 1)
    valid = t_idx < flen
    feats = jnp.where(valid, feats, 0.0)

    flen_f = flen.astype(jnp.float32)
    mean = jnp.sum(feats, axis=1, keepdims=True) * (1.0 / flen_f)           # (n_mels, 1)
    centered = jnp.where(valid, feats - mean, 0.0)
    # NOTE: flen == 1 gives a 0/0 -> NaN, same as the reference module.
    var = jnp.sum(centered * centered, axis=1, keepdims=True) * (1.0 / (flen_f - 1.0))
    std = jnp.sqrt(jnp.maximum(var, LOG_GUARD))               # .clamp(min=guard).sqrt()
    inv_std = pl.reciprocal(std + NORM_EPS, approx=False)     # exact; only n_mels values
    # (feats - mean) == centered at valid positions; invalid lanes are already 0,
    # matching the final masked_fill in the reference.
    out_ref[0] = centered * inv_std


# -------------------------------- wrapper -----------------------------------
def _vmem_capacity_bytes() -> int:
    try:
        return int(pltpu.get_tpu_info().vmem_capacity_bytes)
    except Exception:
        return 128 * 1024 * 1024


@jax.jit
def filterbank_features(input_signal: jnp.ndarray, length: jnp.ndarray):
    """input_signal: (B, L) float32; length: (B,) int32. Returns (features,) with
    features shaped (B, n_mels, T), T = L // hop + 1 — same as FilterbankFeaturesTA."""
    B, L = input_signal.shape
    feature_lengths = (length // HOP_LENGTH + 1).astype(jnp.int32)

    pad = N_FFT // 2
    if L < pad + 1:
        raise ValueError(f"reflect padding requires L >= {pad + 1} samples (got {L})")

    t_frames = 1 + L // HOP_LENGTH
    t_pad = ((t_frames + 127) // 128) * 128       # lane-dense output / MXU-friendly T
    n_chunks = t_pad + 8                          # frame t spans hop-chunks t..t+3 (8-aligned)
    total = n_chunks * HOP_LENGTH                 # always >= L + n_fft

    # eval mode: dithering is a training-only no-op.
    # preemphasis stays wrapper-side: torch reflect-pads the *preemphasized* signal, so
    # fusing it into the kernel would change the edge-frame values.  Under jit it fuses
    # with the concatenate below into ~one HBM pass.
    prev = jnp.pad(input_signal, ((0, 0), (1, 0)))[:, :-1]
    signals = input_signal - PREEMPH * prev

    # torch.stft(center=True) reflect pad + zero pad to a whole number of hop chunks,
    # expressed as a single concatenate (one fused pass; no transpose through HBM).
    left = signals[:, 1:pad + 1][:, ::-1]
    right = signals[:, -(pad + 1):-1][:, ::-1]
    tail = jnp.zeros((B, total - (L + 2 * pad)), signals.dtype)
    padded = jnp.concatenate([left, signals, right, tail], axis=1)
    # (B, n_chunks, hop): element [b, c, k] = padded[b, c*hop + k]  (pure reshape, no copy)
    chunks = padded.reshape(B, n_chunks, HOP_LENGTH)

    grid_spec = pltpu.PrefetchScalarGridSpec(
        num_scalar_prefetch=1,
        grid=(B,),
        in_specs=[
            pl.BlockSpec((1, n_chunks, HOP_LENGTH), lambda b, fl: (b, 0, 0)),
            # Grid-invariant operands: single-buffered to save VMEM.
            pl.BlockSpec((2 * N_FREQS, N_FFT), lambda b, fl: (0, 0),
                         pipeline_mode=pl.Buffered(1)),
            pl.BlockSpec((N_MELS, N_FREQS), lambda b, fl: (0, 0),
                         pipeline_mode=pl.Buffered(1)),
        ],
        out_specs=pl.BlockSpec((1, N_MELS, t_pad), lambda b, fl: (b, 0, 0)),
        scratch_shapes=[pltpu.VMEM((N_FFT, t_pad), jnp.bfloat16)],
    )

    # Per-step VMEM footprint estimate (f32 temps + bf16 matmul operands).
    vmem_bytes = 4 * (
        2 * n_chunks * HOP_LENGTH            # chunk tile (double-buffered, f32)
        + 2 * N_MELS * t_pad                 # output (double-buffered, f32)
        + 2 * HOP_LENGTH * n_chunks          # in-kernel transpose source/result temps
        + (2 * N_FREQS) * t_pad              # y (f32)
        + N_FREQS * t_pad                    # power (f32)
        + 6 * N_MELS * t_pad                 # epilogue temps (f32)
    ) + 2 * (
        (2 * N_FREQS) * N_FFT                # WT (bf16, single-buffered)
        + N_MELS * N_FREQS                   # FBT (bf16, single-buffered)
        + N_FFT * t_pad                      # frames scratch (bf16)
        + N_FREQS * t_pad                    # power cast to bf16
    )
    # Always set the scoped limit (v5e default is only 16 MiB) but never exceed the
    # device's physical VMEM (64 MiB/TC on v7x) — leave ~15% headroom for compiler temps.
    vmem_limit = int(min(max(vmem_bytes * 3 // 2, 32 * 1024 * 1024),
                         int(0.85 * _vmem_capacity_bytes())))

    out = pl.pallas_call(
        _melspec_kernel,
        out_shape=jax.ShapeDtypeStruct((B, N_MELS, t_pad), jnp.float32),
        grid_spec=grid_spec,
        compiler_params=pltpu.CompilerParams(
            dimension_semantics=("parallel",),
            vmem_limit_bytes=vmem_limit,
        ),
    )(feature_lengths, chunks, _WT, _FBT)

    # eval mode: _apply_pad_to is a no-op (training-only); drop lane padding.
    features = out[:, :, :t_frames]               # (B, n_mels, T) == PyTorch (N, C, T)
    return (features,)


if __name__ == "__main__":
    key = jax.random.PRNGKey(0)
    B, L = 2, 1600                                # 0.1 s of 16 kHz audio per batch
    input_signal = 0.1 * jax.random.normal(key, (B, L), dtype=jnp.float32)
    length = jnp.array([1600, 1280], dtype=jnp.int32)

    (features,) = filterbank_features(input_signal, length)
    features = jax.block_until_ready(features)

    assert features.shape == (B, N_MELS, 1 + L // HOP_LENGTH)
    assert bool(jnp.all(jnp.isfinite(features)))
    print("KERNEL_OK")
</pallas_src>

<mosaic_0001>
module attributes {stable_mosaic.version = 11 : i64} {
  func.func @_melspec_kernel(%arg0: i32, %arg1: memref<2xi32, #tpu.memory_space<smem>>, %arg2: memref<1x136x160xf32, #tpu.memory_space<vmem>>, %arg3: memref<512x512xbf16, #tpu.memory_space<vmem>>, %arg4: memref<64x256xbf16, #tpu.memory_space<vmem>>, %arg5: memref<1x64x128xf32, #tpu.memory_space<vmem>>, %arg6: memref<512x128xbf16, #tpu.memory_space<vmem>>) attributes {dimension_semantics = [#tpu.dimension_semantics<parallel>], iteration_bounds = array<i64: 2>, scalar_prefetch = 1 : i64, scratch_operands = 1 : i64, tpu.core_type = #tpu.core_type<tc>, window_params = [{transform_indices = @transform_0, window_bounds = array<i64: 1, 136, 160>}, {pipeline_mode = #tpu.pipeline_mode<synchronous>, transform_indices = @transform_1, window_bounds = array<i64: 512, 512>}, {pipeline_mode = #tpu.pipeline_mode<synchronous>, transform_indices = @transform_2, window_bounds = array<i64: 64, 256>}, {transform_indices = @transform_3, window_bounds = array<i64: 1, 64, 128>}]} {
    %c0 = arith.constant 0 : index
    %c0_0 = arith.constant 0 : index
    %c0_1 = arith.constant 0 : index
    %0 = vector.load %arg2[%c0, %c0_0, %c0_1] : memref<1x136x160xf32, #tpu.memory_space<vmem>>, vector<1x136x160xf32>
    %1 = vector.shape_cast %0 : vector<1x136x160xf32> to vector<136x160xf32>
    %2 = tpu.transpose %1, [1, 0] : vector<136x160xf32> -> vector<160x136xf32>
    %3 = vector.extract_strided_slice %2 {offsets = [0, 0], sizes = [160, 128], strides = [1, 1]} : vector<160x136xf32> to vector<160x128xf32>
    %4 = arith.truncf %3 : vector<160x128xf32> to vector<160x128xbf16>
    %c0_2 = arith.constant 0 : index
    %c0_3 = arith.constant 0 : index
    %5 = vector.load %arg6[%c0_2, %c0_3] : memref<512x128xbf16, #tpu.memory_space<vmem>>, vector<160x128xbf16>
    tpu.vector_store %arg6[%c0_2, %c0_3], %4 {strides = array<i32>} : memref<512x128xbf16, #tpu.memory_space<vmem>>, vector<160x128xbf16>,
    %6 = vector.extract_strided_slice %2 {offsets = [0, 1], sizes = [160, 128], strides = [1, 1]} : vector<160x136xf32> to vector<160x128xf32>
    %7 = arith.truncf %6 : vector<160x128xf32> to vector<160x128xbf16>
    %c160 = arith.constant 160 : index
    %c0_4 = arith.constant 0 : index
    %8 = vector.load %arg6[%c160, %c0_4] : memref<512x128xbf16, #tpu.memory_space<vmem>>, vector<160x128xbf16>
    tpu.vector_store %arg6[%c160, %c0_4], %7 {strides = array<i32>} : memref<512x128xbf16, #tpu.memory_space<vmem>>, vector<160x128xbf16>,
    %9 = vector.extract_strided_slice %2 {offsets = [0, 2], sizes = [160, 128], strides = [1, 1]} : vector<160x136xf32> to vector<160x128xf32>
    %10 = arith.truncf %9 : vector<160x128xf32> to vector<160x128xbf16>
    %c320 = arith.constant 320 : index
    %c0_5 = arith.constant 0 : index
    %11 = vector.load %arg6[%c320, %c0_5] : memref<512x128xbf16, #tpu.memory_space<vmem>>, vector<160x128xbf16>
    tpu.vector_store %arg6[%c320, %c0_5], %10 {strides = array<i32>} : memref<512x128xbf16, #tpu.memory_space<vmem>>, vector<160x128xbf16>,
    %12 = vector.extract_strided_slice %2 {offsets = [0, 3], sizes = [32, 128], strides = [1, 1]} : vector<160x136xf32> to vector<32x128xf32>
    %13 = arith.truncf %12 : vector<32x128xf32> to vector<32x128xbf16>
    %c480 = arith.constant 480 : index
    %c0_6 = arith.constant 0 : index
    %14 = vector.load %arg6[%c480, %c0_6] : memref<512x128xbf16, #tpu.memory_space<vmem>>, vector<32x128xbf16>
    tpu.vector_store %arg6[%c480, %c0_6], %13 {strides = array<i32>} : memref<512x128xbf16, #tpu.memory_space<vmem>>, vector<32x128xbf16>,
    %c0_7 = arith.constant 0 : index
    %c0_8 = arith.constant 0 : index
    %15 = vector.load %arg3[%c0_7, %c0_8] : memref<512x512xbf16, #tpu.memory_space<vmem>>, vector<512x512xbf16>
    %c0_9 = arith.constant 0 : index
    %c0_10 = arith.constant 0 : index
    %16 = vector.load %arg6[%c0_9, %c0_10] : memref<512x128xbf16, #tpu.memory_space<vmem>>, vector<512x128xbf16>
    %cst = arith.constant dense<0.000000e+00> : vector<512x128xf32>
    %17 = tpu.matmul %15, %16, %cst {dimension_numbers = #tpu.dot_dimension_numbers<[1], [0], [0], [1], [0, 0, 1, 1], [], []>} : vector<512x512xbf16>, vector<512x128xbf16>, vector<512x128xf32> -> vector<512x128xf32>
    %18 = vector.extract_strided_slice %17 {offsets = [0, 0], sizes = [256, 128], strides = [1, 1]} : vector<512x128xf32> to vector<256x128xf32>
    %19 = vector.extract_strided_slice %17 {offsets = [256, 0], sizes = [256, 128], strides = [1, 1]} : vector<512x128xf32> to vector<256x128xf32>
    %20 = arith.mulf %18, %18 : vector<256x128xf32>
    %21 = arith.mulf %19, %19 : vector<256x128xf32>
    %22 = arith.addf %20, %21 : vector<256x128xf32>
    %c0_11 = arith.constant 0 : index
    %c0_12 = arith.constant 0 : index
    %23 = vector.load %arg4[%c0_11, %c0_12] : memref<64x256xbf16, #tpu.memory_space<vmem>>, vector<64x256xbf16>
    %24 = arith.truncf %22 : vector<256x128xf32> to vector<256x128xbf16>
    %cst_13 = arith.constant dense<0.000000e+00> : vector<64x128xf32>
    %25 = tpu.matmul %23, %24, %cst_13 {dimension_numbers = #tpu.dot_dimension_numbers<[1], [0], [0], [1], [0, 0, 1, 1], [], []>} : vector<64x256xbf16>, vector<256x128xbf16>, vector<64x128xf32> -> vector<64x128xf32>
    %cst_14 = arith.constant 5.96046448E-8 : f32
    %26 = vector.broadcast %cst_14 : f32 to vector<64x128xf32>
    %27 = arith.addf %25, %26 : vector<64x128xf32>
    %28 = math.log %27 : vector<64x128xf32>
    %29 = arith.index_cast %arg0 : i32 to index
    %30 = memref.load %arg1[%29] : memref<2xi32, #tpu.memory_space<smem>>
    %31 = tpu.iota {dimensions = array<i32: 1>} : vector<64x128xi32>
    %32 = vector.broadcast %30 : i32 to vector<64x128xi32>
    %33 = arith.cmpi slt, %31, %32 : vector<64x128xi32>
    %cst_15 = arith.constant 0.000000e+00 : f32
    %34 = vector.broadcast %cst_15 : f32 to vector<64x128xf32>
    %35 = arith.select %33, %28, %34 : vector<64x128xi1>, vector<64x128xf32>
    %36 = arith.sitofp %30 : i32 to f32
    %cst_16 = arith.constant dense<0.000000e+00> : vector<64xf32>
    %37 = vector.multi_reduction <add>, %35, %cst_16 [1] : vector<64x128xf32> to vector<64xf32>
    %38 = vector.shape_cast %37 : vector<64xf32> to vector<64x1xf32>
    %cst_17 = arith.constant 1.000000e+00 : f32
    %39 = arith.divf %cst_17, %36 : f32
    %40 = vector.broadcast %39 : f32 to vector<64x1xf32>
    %41 = arith.mulf %38, %40 : vector<64x1xf32>
    %42 = vector.broadcast %41 : vector<64x1xf32> to vector<64x128xf32>
    %43 = arith.subf %35, %42 : vector<64x128xf32>
    %cst_18 = arith.constant 0.000000e+00 : f32
    %44 = vector.broadcast %cst_18 : f32 to vector<64x128xf32>
    %45 = arith.select %33, %43, %44 : vector<64x128xi1>, vector<64x128xf32>
    %46 = arith.mulf %45, %45 : vector<64x128xf32>
    %cst_19 = arith.constant dense<0.000000e+00> : vector<64xf32>
    %47 = vector.multi_reduction <add>, %46, %cst_19 [1] : vector<64x128xf32> to vector<64xf32>
    %48 = vector.shape_cast %47 : vector<64xf32> to vector<64x1xf32>
    %cst_20 = arith.constant 1.000000e+00 : f32
    %49 = arith.subf %36, %cst_20 : f32
    %cst_21 = arith.constant 1.000000e+00 : f32
    %50 = arith.divf %cst_21, %49 : f32
    %51 = vector.broadcast %50 : f32 to vector<64x1xf32>
    %52 = arith.mulf %48, %51 : vector<64x1xf32>
    %cst_22 = arith.constant 5.96046448E-8 : f32
    %53 = vector.broadcast %cst_22 : f32 to vector<64x1xf32>
    %54 = arith.maximumf %52, %53 : vector<64x1xf32>
    %55 = math.sqrt %54 : vector<64x1xf32>
    %cst_23 = arith.constant 9.99999974E-6 : f32
    %56 = vector.broadcast %cst_23 : f32 to vector<64x1xf32>
    %57 = arith.addf %55, %56 : vector<64x1xf32>
    %58 = tpu.reciprocal %57 : vector<64x1xf32> -> vector<64x1xf32>
    %59 = vector.broadcast %58 : vector<64x1xf32> to vector<64x128xf32>
    %60 = arith.mulf %45, %59 : vector<64x128xf32>
    %c0_24 = arith.constant 0 : index
    %c0_25 = arith.constant 0 : index
    %c0_26 = arith.constant 0 : index
    %61 = vector.load %arg5[%c0_24, %c0_25, %c0_26] : memref<1x64x128xf32, #tpu.memory_space<vmem>>, vector<1x64x128xf32>
    %62 = vector.shape_cast %61 : vector<1x64x128xf32> to vector<64x128xf32>
    %63 = vector.shape_cast %60 : vector<64x128xf32> to vector<1x64x128xf32>
    tpu.vector_store %arg5[%c0_24, %c0_25, %c0_26], %63 {strides = array<i32>} : memref<1x64x128xf32, #tpu.memory_space<vmem>>, vector<1x64x128xf32>,
    return
  }
  func.func @transform_0(%arg0: i32, %arg1: memref<2xi32, #tpu.memory_space<smem>>) -> (i32, i32, i32) {
    %c0_i32 = arith.constant 0 : i32
    %c0_i32_0 = arith.constant 0 : i32
    %c0_i32_1 = arith.constant 0 : i32
    return %arg0, %c0_i32, %c0_i32_0 : i32, i32, i32
  }
  func.func @transform_1(%arg0: i32, %arg1: memref<2xi32, #tpu.memory_space<smem>>) -> (i32, i32) {
    %c0_i32 = arith.constant 0 : i32
    %c0_i32_0 = arith.constant 0 : i32
    %c0_i32_1 = arith.constant 0 : i32
    return %c0_i32, %c0_i32_0 : i32, i32
  }
  func.func @transform_2(%arg0: i32, %arg1: memref<2xi32, #tpu.memory_space<smem>>) -> (i32, i32) {
    %c0_i32 = arith.constant 0 : i32
    %c0_i32_0 = arith.constant 0 : i32
    %c0_i32_1 = arith.constant 0 : i32
    return %c0_i32, %c0_i32_0 : i32, i32
  }
  func.func @transform_3(%arg0: i32, %arg1: memref<2xi32, #tpu.memory_space<smem>>) -> (i32, i32, i32) {
    %c0_i32 = arith.constant 0 : i32
    %c0_i32_0 = arith.constant 0 : i32
    %c0_i32_1 = arith.constant 0 : i32
    return %arg0, %c0_i32, %c0_i32_0 : i32, i32, i32
  }
}

</mosaic_0001>

<bundles_post_ra>
// kernel: filterbank_features.1
= control target key start
LH: loop header
LB: loop body
LE: loop exit
PB: predicated region body
PF: predicated region fallthrough
CT: control target
= control target key end

     0   :  { %s4059_s0 = inlined_call_operand.vmem [shape: s32[2], index: 0, kind: input, shape index: {}]   ;;  %s4060_s1 = inlined_call_operand.vmem [shape: f32[2,136,160], index: 1, kind: input, shape index: {}]   ;;  %s4061_s2 = inlined_call_operand.vmem [shape: bf16[512,512], index: 2, kind: input, shape index: {}]   ;;  %s4062_s3 = inlined_call_operand.vmem [shape: bf16[64,256], index: 3, kind: input, shape index: {}]   ;;  %s4063_s4 = inlined_call_operand.vmem [shape: f32[2,64,128], index: 4, kind: output, shape index: {}]  }
   0x1   :  { %s9_s17 = sshll.u32 %s4059_s0, 4  ;;  %s10_s17 = int_to_ptr.vmem [resolvable:$true] %s9_s17 }
   0x2   :  { %s2976_s18 = scalar_lea.vmem %s10_s17, 16  ;;  %p2981_p1 = scmp.lt.s32.totalorder %s10_s17, %s10_s17 }
   0x3   :  { %p2977_p0 = scmp.ne.s32.totalorder %s10_s17, %s2976_s18  ;;  %p2982_p2 = scmp.lt.s32.totalorder %s2976_s18, %s2976_s18 }
   0x5   :  { %p2983_p3 = por %p2982_p2, %p2981_p1 }
   0x7   :  { %p2984_p4 = pnand %p2983_p3, %p2977_p0 }
   0x9   :  { %2987 = shalt.err (!%p2984_p4)  }
   0xa   :  { %s2998_s19 = smov [#allocation4]  }
   0xb   :  { %12 = dma.vmem_to_smem %s10_s17, 16, %s2998_s19, [#allocation3] }
   0xc   :  { %2992 = dma.done.wait [#allocation3], 16 }
   0xd   :  { %2993 = vsyncadd [#allocation3], 4294967280 }
   0xe   :  { %14 = sfence }
   0xf   :  { %s3031_s20 = smov 0  }
  0x10 LB: > { %s3037_s0 = sadd.s32 4294967295, %s2996_s20   ;;  %p2417_p5 = scmp.ge.s32.totalorder %s2996_s20, 1  ;;  %s2996_s20 = sphi %s3031_s20, %s20_s20  }
  0x11   : > { %p144_p6 = scmp.lt.s32.totalorder %s2996_s20, 3 }
  0x13   : > { %p145_p7 = pnand %p2417_p5, %p144_p6 }
  0x14   : > { %p168_p8 = scmp.lt.s32.totalorder (!%p145_p7), %s3037_s0, 1  ;;  %v2999_v7 = vmov (!%p145_p7), 0   ;;  %s3000_s26 = smov (!%p145_p7), 127   ;;  %vm431_vm0 = vcmask (!%p145_p7), 1039360   ;;  %vm502_vm1 = vcmask (!%p145_p7), 1031168   ;;  %vm541_vm2 = vcmask (!%p145_p7), 1022976  }
  0x15   : > { %148 = sbr.rel (%p145_p7) target bundleno = 1465 (0x5b9), region = 32  ;;  %1348 = vmatprep.subr.bf16.mxu0 (!%p145_p7), %v2999_v7  ;;  %2601 = vmatprep.subr.bf16.mxu1 (!%p145_p7), %v2999_v7  ;;  %s3001_s29 = smov (!%p145_p7), 126  }
  0x16   : > { %s3002_s30 = smov (!%p145_p7), 125   ;;  %s3962_s11 = sld [smem:[#allocation4 + %s3037_s0]] (!%p145_p7) }
  0x1c   : > { %s3043_s21 = scalar_select %p168_p8, %s3037_s0, 1 }
  0x1d   : > { %s2180_s12 = scvt.s32.f32 %s3962_s11 }
  0x1e   : > { %s2701_s22 = smul.u32 272, %s3043_s21  ;;  %s2560_s15 = sshll.u32 %s3043_s21, 6 }
  0x1f   : > { %s2557_s13 = sadd.f32 -1.0, %s2180_s12  ;;  %s4038_s18 = scalar_lea.vmem %s4063_s4, %s2560_s15 }
  0x20   : > { %s3049_s25 = scalar_lea.vmem %s4060_s1, %s2701_s22 }
  0x21   : > { %v211_v0 = vld [vmem:[%s3049_s25 + $0x100] sm:$0xff]  ;;  %v181_v2 = vld [vmem:[%s3049_s25 + $0x10] sm:$0xff]  ;;  %v180_v18 = vld [vmem:[%s3049_s25 + $0x8] sm:$0xff] }
  0x22   : > { %v179_v1 = vld [vmem:[%s3049_s25] sm:$0xff]  ;;  %277 = vxpose.xlu1.b32.start.end [1/1] (short) %v211_v0, 128  ;;  %v185_v4 = vld [vmem:[%s3049_s25 + $0x30] sm:$0xff]  ;;  %v212_v19 = vld [vmem:[%s3049_s25 + $0x108] sm:$0xff] }
  0x23   : > { %213 = vxpose.xlu0.b32.start [1/16] %v179_v1, 128  ;;  %v183_v3 = vld [vmem:[%s3049_s25 + $0x20] sm:$0xff]  ;;  %v189_v6 = vld [vmem:[%s3049_s25 + $0x50] sm:$0xff]  ;;  %v182_v20 = vld [vmem:[%s3049_s25 + $0x18] sm:$0xff] }
  0x24   : > { %v187_v5 = vld [vmem:[%s3049_s25 + $0x40] sm:$0xff]  ;;  %v193_v9 = vld [vmem:[%s3049_s25 + $0x70] sm:$0xff]  ;;  %v184_v21 = vld [vmem:[%s3049_s25 + $0x28] sm:$0xff] }
  0x25   : > { %v191_v8 = vld [vmem:[%s3049_s25 + $0x60] sm:$0xff]  ;;  %v197_v11 = vld [vmem:[%s3049_s25 + $0x90] sm:$0xff]  ;;  %v186_v22 = vld [vmem:[%s3049_s25 + $0x38] sm:$0xff] }
  0x26   : > { %v195_v10 = vld [vmem:[%s3049_s25 + $0x80] sm:$0xff]  ;;  %v201_v13 = vld [vmem:[%s3049_s25 + $0xb0] sm:$0xff]  ;;  %v188_v23 = vld [vmem:[%s3049_s25 + $0x48] sm:$0xff] }
  0x27   : > { %214 = vxpose.xlu0.b32.cont [2/16] %v181_v2, 128  ;;  %v199_v12 = vld [vmem:[%s3049_s25 + $0xa0] sm:$0xff]  ;;  %v205_v15 = vld [vmem:[%s3049_s25 + $0xd0] sm:$0xff]  ;;  %v190_v24 = vld [vmem:[%s3049_s25 + $0x58] sm:$0xff] }
  0x28   : > { %v203_v14 = vld [vmem:[%s3049_s25 + $0xc0] sm:$0xff]  ;;  %v209_v17 = vld [vmem:[%s3049_s25 + $0xf0] sm:$0xff]  ;;  %v192_v25 = vld [vmem:[%s3049_s25 + $0x68] sm:$0xff] }
  0x29   : > { %v207_v16 = vld [vmem:[%s3049_s25 + $0xe0] sm:$0xff]  ;;  %v194_v26 = vld [vmem:[%s3049_s25 + $0x78] sm:$0xff]  ;;  %v196_v27 = vld [vmem:[%s3049_s25 + $0x88] sm:$0xff] }
  0x2a   : > { %v198_v28 = vld [vmem:[%s3049_s25 + $0x98] sm:$0xff]  ;;  %v200_v29 = vld [vmem:[%s3049_s25 + $0xa8] sm:$0xff] }
  0x2b   : > { %215 = vxpose.xlu0.b32.cont [3/16] %v183_v3, 128  ;;  %v202_v30 = vld [vmem:[%s3049_s25 + $0xb8] sm:$0xff]  ;;  %v204_v31 = vld [vmem:[%s3049_s25 + $0xc8] sm:$0xff] }
  0x2c   : > { %v206_v32 = vld [vmem:[%s3049_s25 + $0xd8] sm:$0xff]  ;;  %v208_v33 = vld [vmem:[%s3049_s25 + $0xe8] sm:$0xff] }
  0x2d   : > { %v210_v34 = vld [vmem:[%s3049_s25 + $0xf8] sm:$0xff] }
  0x2f   : > { %216 = vxpose.xlu0.b32.cont [4/16] %v185_v4, 128 }
  0x33   : > { %217 = vxpose.xlu0.b32.cont [5/16] %v187_v5, 128 }
  0x37   : > { %218 = vxpose.xlu0.b32.cont [6/16] %v189_v6, 128 }
  0x3b   : > { %219 = vxpose.xlu0.b32.cont [7/16] %v191_v8, 128 }
  0x3f   : > { %220 = vxpose.xlu0.b32.cont [8/16] %v193_v9, 128 }
  0x43   : > { %221 = vxpose.xlu0.b32.cont [9/16] %v195_v10, 128 }
  0x47   : > { %222 = vxpose.xlu0.b32.cont [10/16] %v197_v11, 128 }
  0x4b   : > { %223 = vxpose.xlu0.b32.cont [11/16] %v199_v12, 128 }
  0x4f   : > { %224 = vxpose.xlu0.b32.cont [12/16] %v201_v13, 128 }
  0x53   : > { %225 = vxpose.xlu0.b32.cont [13/16] %v203_v14, 128 }
  0x57   : > { %226 = vxpose.xlu0.b32.cont [14/16] %v205_v15, 128 }
  0x5b   : > { %227 = vxpose.xlu0.b32.cont [15/16] %v207_v16, 128 }
  0x5f   : > { %228 = vxpose.xlu0.b32.end [16/16] %v209_v17, 128  ;;  %245 = vxpose.xlu1.b32.start [1/16] (narrow) %v180_v18, 32 }
  0x63   : > { %309 = vxpose.xlu0.b32.start.end [1/1] (short) (narrow) %v212_v19, 32  ;;  %246 = vxpose.xlu1.b32.cont [2/16] (narrow) %v182_v20, 32 }
  0x67   : > { %247 = vxpose.xlu1.b32.cont [3/16] (narrow) %v184_v21, 32 }
  0x6b   : > { %248 = vxpose.xlu1.b32.cont [4/16] (narrow) %v186_v22, 32  ;;  %v2722_v22 = vld [vmem:[%s4061_s2 + $0x4] ss:$16 sps:$4 sm:$0xff]  }
  0x6c   : > { %1380 = vmatprep.mubr.bf16.mxu0 %v2722_v22 }
  0x6f   : > { %249 = vxpose.xlu1.b32.cont [5/16] (narrow) %v188_v23, 32 }
  0x73   : > { %250 = vxpose.xlu1.b32.cont [6/16] (narrow) %v190_v24, 32 }
  0x77   : > { %251 = vxpose.xlu1.b32.cont [7/16] (narrow) %v192_v25, 32 }
  0x7b   : > { %252 = vxpose.xlu1.b32.cont [8/16] (narrow) %v194_v26, 32 }
  0x7f   : > { %253 = vxpose.xlu1.b32.cont [9/16] (narrow) %v196_v27, 32 }
  0x83   : > { %254 = vxpose.xlu1.b32.cont [10/16] (narrow) %v198_v28, 32 }
  0x87   : > { %255 = vxpose.xlu1.b32.cont [11/16] (narrow) %v200_v29, 32 }
  0x8b   : > { %256 = vxpose.xlu1.b32.cont [12/16] (narrow) %v202_v30, 32 }
  0x8f   : > { %257 = vxpose.xlu1.b32.cont [13/16] (narrow) %v204_v31, 32 }
  0x93   : > { %258 = vxpose.xlu1.b32.cont [14/16] (narrow) %v206_v32, 32 }
  0x97   : > { %259 = vxpose.xlu1.b32.cont [15/16] (narrow) %v208_v33, 32  ;;  %v2748_v33 = vld [vmem:[%s4061_s2 + $0x4c] ss:$16 sps:$4 sm:$0xff]  }
  0x98   : > { %1685 = vmatprep.mubr.bf16.mxu1 %v2748_v33  ;;  %v2738_v33 = vld [vmem:[%s4061_s2 + $0xc4] ss:$16 sps:$4 sm:$0xff]  }
  0x9b   : > { %260 = vxpose.xlu1.b32.end [16/16] (narrow) %v210_v34, 32 }
  0xa2   : > { %v293_v35 = vpop.trf.xlu1 }
  0xa3   : > { %v229_v36 = vpop.trf.xlu0 }
  0xa6   : > { %v294_v37 = vpop.trf.xlu1 }
  0xa7   : > { %v230_v38 = vpop.trf.xlu0  ;;  %v3087_v39 = vpack.c.bf16 %v294_v37, %v293_v35 }
  0xa8   : > { %v3089_v40 = vpack.c.bf16 %v230_v38, %v229_v36 }
  0xa9   : > { %393 = vrot.lane.b32.xlu0 %v3087_v39, %s3000_s26 }
  0xaa   : > { %1349 = vmatpush1.bf16.msra.mxu0 %v3089_v40  ;;  %v295_v41 = vpop.trf.xlu1 }
  0xab   : > { %v231_v42 = vpop.trf.xlu0  ;;  %1350 = vmatprep.subr.bf16.mxu0 %v2999_v7 }
  0xae   : > { %v296_v43 = vpop.trf.xlu1 }
  0xaf   : > { %v232_v44 = vpop.trf.xlu0  ;;  %v3099_v50 = vpack.c.bf16 %v296_v43, %v295_v41 }
  0xb0   : > { %v3095_v45 = vpack.c.bf16 %v232_v44, %v231_v42 }
  0xb2   : > { %1351 = vmatpush1.bf16.msra.mxu0 %v3095_v45  ;;  %v297_v46 = vpop.trf.xlu1 }
  0xb3   : > { %v233_v47 = vpop.trf.xlu0  ;;  %1352 = vmatprep.subr.bf16.mxu0 %v2999_v7 }
  0xb6   : > { %v298_v48 = vpop.trf.xlu1 }
  0xb7   : > { %v234_v49 = vpop.trf.xlu0  ;;  %v3101_v51 = vpack.c.bf16 %v298_v48, %v297_v46 }
  0xb8   : > { %v3103_v52 = vpack.c.bf16 %v234_v49, %v233_v47 }
  0xb9   : > { %397 = vrot.lane.b32.xlu1 %v3099_v50, %s3000_s26  ;;  %401 = vrot.lane.b32.xlu0 %v3101_v51, %s3000_s26 }
  0xba   : > { %v299_v53 = vpop.trf.xlu1  ;;  %1353 = vmatpush1.bf16.msra.mxu0 %v3103_v52 }
  0xbb   : > { %v235_v54 = vpop.trf.xlu0  ;;  %1354 = vmatprep.subr.bf16.mxu0 %v2999_v7 }
  0xbe   : > { %v300_v55 = vpop.trf.xlu1 }
  0xbf   : > { %v236_v56 = vpop.trf.xlu0  ;;  %v3111_v57 = vpack.c.bf16 %v300_v55, %v299_v53 }
  0xc0   : > { %v3113_v58 = vpack.c.bf16 %v236_v56, %v235_v54  ;;  %v2720_v56 = vld [vmem:[%s4061_s2] ss:$16 sps:$4 sm:$0xff]  }
  0xc1   : > { %405 = vrot.lane.b32.xlu0 %v3111_v57, %s3000_s26 }
  0xc2   : > { %1355 = vmatpush1.bf16.msra.mxu0 %v3113_v58  ;;  %v301_v59 = vpop.trf.xlu1 }
  0xc3   : > { %v237_v60 = vpop.trf.xlu0  ;;  %1356 = vmatprep.subr.bf16.mxu0 %v2999_v7 }
  0xc6   : > { %v302_v61 = vpop.trf.xlu1 }
  0xc7   : > { %v238_v62 = vpop.trf.xlu0  ;;  %v3119_v63 = vpack.c.bf16 %v302_v61, %v301_v59  ;;  %v2723_v59 = vld [vmem:[%s4061_s2 + $0x24] ss:$16 sps:$4 sm:$0xff]  }
  0xc8   : > { %v3121_v0 = vpack.c.bf16 %v238_v62, %v237_v60 }
  0xc9   : > { %409 = vrot.lane.b32.xlu1 %v3119_v63, %s3000_s26 }
  0xca   : > { %1357 = vmatpush1.bf16.msra.mxu0 %v3121_v0  ;;  %v303_v1 = vpop.trf.xlu1 }
  0xcb   : > { %v239_v2 = vpop.trf.xlu0  ;;  %1358 = vmatprep.subr.bf16.mxu0 %v2999_v7 }
  0xce   : > { %v304_v3 = vpop.trf.xlu1 }
  0xcf   : > { %v240_v4 = vpop.trf.xlu0  ;;  %v366_v21 = vpack.c.bf16 %v304_v3, %v303_v1  ;;  %v2726_v3 = vld [vmem:[%s4061_s2 + $0x44] ss:$16 sps:$4 sm:$0xff]  }
  0xd0   : > { %v3127_v5 = vpack.c.bf16 %v240_v4, %v239_v2 }
  0xd2   : > { %1359 = vmatpush1.bf16.msra.mxu0 %v3127_v5  ;;  %v305_v6 = vpop.trf.xlu1 }
  0xd3   : > { %v241_v8 = vpop.trf.xlu0  ;;  %1360 = vmatprep.subr.bf16.mxu0 %v2999_v7 }
  0xd6   : > { %v306_v9 = vpop.trf.xlu1 }
  0xd7   : > { %v242_v10 = vpop.trf.xlu0  ;;  %v367_v11 = vpack.c.bf16 %v306_v9, %v305_v6  ;;  %v2728_v9 = vld [vmem:[%s4061_s2 + $0x40] ss:$16 sps:$4 sm:$0xff]  }
  0xd8   : > { %v347_v12 = vpack.c.bf16 %v242_v10, %v241_v8 }
  0xd9   : > { %417 = vrot.lane.b32.xlu0 %v367_v11, %s3000_s26 }
  0xda   : > { %1361 = vmatpush1.bf16.msra.mxu0 %v347_v12  ;;  %v307_v13 = vpop.trf.xlu1 }
  0xdb   : > { %v243_v14 = vpop.trf.xlu0  ;;  %1362 = vmatprep.subr.bf16.mxu0 %v2999_v7 }
  0xdd   : > { %391 = vrot.lane.b32.xlu0 %v3089_v40, %s3000_s26 }
  0xde   : > { %v308_v15 = vpop.trf.xlu1 }
  0xdf   : > { %v244_v16 = vpop.trf.xlu0  ;;  %v368_v17 = vpack.c.bf16 %v308_v15, %v307_v13 }
  0xe0   : > { %v348_v18 = vpack.c.bf16 %v244_v16, %v243_v14  ;;  %v2731_v16 = vld [vmem:[%s4061_s2 + $0x60] ss:$16 sps:$4 sm:$0xff]  }
  0xe1   : > { %421 = vrot.lane.b32.xlu1 %v368_v17, %s3000_s26  ;;  %395 = vrot.lane.b32.xlu0 %v3095_v45, %s3000_s26 }
  0xe2   : > { %v261_v20 = vpop.trf.xlu1  ;;  %1363 = vmatpush1.bf16.msra.mxu0 %v348_v18 }
  0xe3   : > { %v325_v19 = vpop.trf.xlu0  ;;  %1364 = vmatprep.subr.bf16.mxu0 %v2999_v7 }
  0xe5   : > { %413 = vrot.lane.b32.xlu1 %v366_v21, %s3000_s26  ;;  %399 = vrot.lane.b32.xlu0 %v3103_v52, %s3000_s26 }
  0xe6   : > { %v262_v24 = vpop.trf.xlu1 }
  0xe7   : > { %v326_v23 = vpop.trf.xlu0  ;;  %v349_v26 = vpack.c.bf16 %v262_v24, %v261_v20 }
  0xe8   : > { %v369_v25 = vpack.c.bf16 %v326_v23, %v325_v19  ;;  %v2732_v19 = vld [vmem:[%s4061_s2 + $0x84] ss:$16 sps:$4 sm:$0xff]   ;;  %v2734_v23 = vld [vmem:[%s4061_s2 + $0x80] ss:$16 sps:$4 sm:$0xff]  }
  0xe9   : > { %403 = vrot.lane.b32.xlu0 %v3113_v58, %s3000_s26  ;;  %1365 = vmatpush1.bf16.msra.mxu0 %v349_v26 }
  0xea   : > { %425 = vrot.lane.b32.xlu1 %v369_v25, %s3000_s26  ;;  %v263_v28 = vpop.trf.xlu1  ;;  %1366 = vmatprep.subr.bf16.mxu0 %v2999_v7 }
  0xeb   : > { %v327_v27 = vpop.trf.xlu0 }
  0xed   : > { %407 = vrot.lane.b32.xlu0 %v3121_v0, %s3000_s26 }
  0xee   : > { %v264_v30 = vpop.trf.xlu1 }
  0xef   : > { %v328_v29 = vpop.trf.xlu0  ;;  %v350_v32 = vpack.c.bf16 %v264_v30, %v263_v28 }
  0xf0   : > { %v370_v31 = vpack.c.bf16 %v328_v29, %v327_v27 }
  0xf1   : > { %411 = vrot.lane.b32.xlu0 %v3127_v5, %s3000_s26  ;;  %1367 = vmatpush1.bf16.msra.mxu0 %v350_v32 }
  0xf2   : > { %429 = vrot.lane.b32.xlu1 %v370_v31, %s3000_s26  ;;  %1368 = vmatprep.subr.bf16.mxu0 %v2999_v7 }
  0xf5   : > { %415 = vrot.lane.b32.xlu0 %v347_v12, %s3000_s26 }
  0xf6   : > { %464 = vrot.lane.b32.xlu1 %v3087_v39, %s3001_s29 }
  0xf9   : > { %419 = vrot.lane.b32.xlu0 %v348_v18, %s3000_s26 }
  0xfa   : > { %468 = vrot.lane.b32.xlu1 %v3099_v50, %s3001_s29 }
  0xfd   : > { %423 = vrot.lane.b32.xlu0 %v349_v26, %s3000_s26 }
  0xfe   : > { %472 = vrot.lane.b32.xlu1 %v3101_v51, %s3001_s29 }
 0x101   : > { %427 = vrot.lane.b32.xlu0 %v350_v32, %s3000_s26 }
 0x102   : > { %476 = vrot.lane.b32.xlu1 %v3111_v57, %s3001_s29 }
 0x105   : > { %462 = vrot.lane.b32.xlu0 %v3089_v40, %s3001_s29 }
 0x106   : > { %480 = vrot.lane.b32.xlu1 %v3119_v63, %s3001_s29 }
 0x109   : > { %466 = vrot.lane.b32.xlu0 %v3095_v45, %s3001_s29 }
 0x10a   : > { %484 = vrot.lane.b32.xlu1 %v366_v21, %s3001_s29 }
 0x10d   : > { %470 = vrot.lane.b32.xlu0 %v3103_v52, %s3001_s29 }
 0x10e   : > { %488 = vrot.lane.b32.xlu1 %v367_v11, %s3001_s29  ;;  %v2729_v11 = vld [vmem:[%s4061_s2 + $0x64] ss:$16 sps:$4 sm:$0xff]  }
 0x111   : > { %474 = vrot.lane.b32.xlu0 %v3113_v58, %s3001_s29 }
 0x112   : > { %492 = vrot.lane.b32.xlu1 %v368_v17, %s3001_s29 }
 0x115   : > { %478 = vrot.lane.b32.xlu0 %v3121_v0, %s3001_s29  ;;  %v2725_v0 = vld [vmem:[%s4061_s2 + $0x20] ss:$16 sps:$4 sm:$0xff]  }
 0x116   : > { %496 = vrot.lane.b32.xlu1 %v369_v25, %s3001_s29 }
 0x119   : > { %482 = vrot.lane.b32.xlu0 %v3127_v5, %s3001_s29 }
 0x11a   : > { %500 = vrot.lane.b32.xlu1 %v370_v31, %s3001_s29  ;;  %v2737_v31 = vld [vmem:[%s4061_s2 + $0xa0] ss:$16 sps:$4 sm:$0xff]  }
 0x11b   : > { %v394_v34 = vpop.permute.xlu0 %393 }
 0x11d   : > { %486 = vrot.lane.b32.xlu0 %v347_v12, %s3001_s29 }
 0x11e   : > { %535 = vrot.lane.b32.xlu1 %v3087_v39, %s3002_s30 }
 0x121   : > { %490 = vrot.lane.b32.xlu0 %v348_v18, %s3001_s29 }
 0x122   : > { %539 = vrot.lane.b32.xlu1 %v3099_v50, %s3002_s30 }
 0x125   : > { %494 = vrot.lane.b32.xlu0 %v349_v26, %s3001_s29  ;;  %v2735_v26 = vld [vmem:[%s4061_s2 + $0xa4] ss:$16 sps:$4 sm:$0xff]  }
 0x129   : > { %498 = vrot.lane.b32.xlu0 %v350_v32, %s3001_s29 }
 0x12b   : > { %v402_v35 = vpop.permute.xlu0 %401  ;;  %v398_v37 = vpop.permute.xlu1 %397 }
 0x12d   : > { %533 = vrot.lane.b32.xlu0 %v3089_v40, %s3002_s30 }
 0x131   : > { %537 = vrot.lane.b32.xlu0 %v3095_v45, %s3002_s30 }
 0x133   : > { %v406_v36 = vpop.permute.xlu0 %405 }
 0x13b   : > { %v410_v39 = vpop.permute.xlu1 %409 }
 0x14b   : > { %v418_v38 = vpop.permute.xlu0 %417 }
 0x14f   : > { %v392_v41 = vpop.permute.xlu0 %391 }
 0x150   : > { %v432_v42 = vsel %vm431_vm0, %v392_v41, %v394_v34 }
 0x151   : > { %1369 = vmatpush1.bf16.msra.mxu0 %v432_v42  ;;  %v2741_v42 = vld [vmem:[%s4061_s2 + $0xe4] ss:$16 sps:$4 sm:$0xff]  }
 0x152   : > { %1370 = vmatprep.subr.bf16.mxu0 %v2999_v7 }
 0x153   : > { %v422_v43 = vpop.permute.xlu1 %421  ;;  %v396_v44 = vpop.permute.xlu0 %395 }
 0x154   : > { %v433_v46 = vsel %vm431_vm0, %v396_v44, %v398_v37 }
 0x155   : > { %1371 = vmatpush1.bf16.msra.mxu0 %v433_v46 }
 0x156   : > { %1372 = vmatprep.subr.bf16.mxu0 %v2999_v7 }
 0x157   : > { %v400_v40 = vpop.permute.xlu0 %399  ;;  %v414_v47 = vpop.permute.xlu1 %413 }
 0x158   : > { %v434_v45 = vsel %vm431_vm0, %v400_v40, %v402_v35  ;;  %v2743_v40 = vld [vmem:[%s4061_s2 + $0xe0] ss:$16 sps:$4 sm:$0xff]  }
 0x159   : > { %1373 = vmatpush1.bf16.msra.mxu0 %v434_v45 }
 0x15a   : > { %1374 = vmatprep.subr.bf16.mxu0 %v2999_v7 }
 0x15b   : > { %v404_v48 = vpop.permute.xlu0 %403 }
 0x15c   : > { %v435_v49 = vsel %vm431_vm0, %v404_v48, %v406_v36  ;;  %v426_v50 = vpop.permute.xlu1 %425  ;;  %v2744_v48 = vld [vmem:[%s4061_s2 + $0x104] ss:$16 sps:$4 sm:$0xff]  }
 0x15d   : > { %1375 = vmatpush1.bf16.msra.mxu0 %v435_v49 }
 0x15e   : > { %1376 = vmatprep.subr.bf16.mxu0 %v2999_v7 }
 0x15f   : > { %v408_v51 = vpop.permute.xlu0 %407 }
 0x160   : > { %v436_v52 = vsel %vm431_vm0, %v408_v51, %v410_v39 }
 0x161   : > { %1377 = vmatpush1.bf16.msra.mxu0 %v436_v52 }
 0x162   : > { %1378 = vmatprep.subr.bf16.mxu0 %v2999_v7 }
 0x163   : > { %v412_v54 = vpop.permute.xlu0 %411 }
 0x164   : > { %v430_v53 = vpop.permute.xlu1 %429  ;;  %v437_v55 = vsel %vm431_vm0, %v412_v54, %v414_v47  ;;  %v2749_v54 = vld [vmem:[%s4061_s2 + $0x100] ss:$16 sps:$4 sm:$0xff]  }
 0x165   : > { %1379 = vmatpush1.bf16.msra.mxu0 %v437_v55  ;;  %v2750_v55 = vld [vmem:[%s4061_s2 + $0x124] ss:$16 sps:$4 sm:$0xff]  }
 0x166   : > { %1637 = vmatprep.subr.bf16.mxu0 %v2999_v7 }
 0x167   : > { %v416_v58 = vpop.permute.xlu0 %415 }
 0x168   : > { %v465_v57 = vpop.permute.xlu1 %464  ;;  %v438_v60 = vsel %vm431_vm0, %v416_v58, %v418_v38  ;;  %1381 = vmatmul.mubr.bf16.vlgmr.msra.gmra.mrb[0].mxu0 %v2720_v56  ;;  %v2740_v38 = vld [vmem:[%s4061_s2 + $0xc0] ss:$16 sps:$4 sm:$0xff]   ;;  %v2756_v58 = vld [vmem:[%s4061_s2 + $0x144] ss:$16 sps:$4 sm:$0xff]  }
 0x169   : > { %1638 = vmatpush1.bf16.msra.mxu0 %v438_v60  ;;  %2617 = vmatpush1.bf16.msra.mxu1 %v438_v60  ;;  %v2754_v56 = vld [vmem:[%s4061_s2 + $0x120] ss:$16 sps:$4 sm:$0xff]  }
 0x16a   : > { %1639 = vmatprep.subr.bf16.mxu0 %v2999_v7  ;;  %2602 = vmatprep.subr.bf16.mxu1 %v2999_v7  ;;  %v2760_v60 = vld [vmem:[%s4061_s2 + $0x140] ss:$16 sps:$4 sm:$0xff]  }
 0x16b   : > { %v420_v62 = vpop.permute.xlu0 %419  ;;  %1388 = vmatprep.mubr.bf16.mxu0 %v2723_v59  ;;  %v2758_v59 = vld [vmem:[%s4061_s2 + $0x8c] ss:$16 sps:$4 sm:$0xff]  }
 0x16c   : > { %v469_v61 = vpop.permute.xlu1 %468  ;;  %v439_v63 = vsel %vm431_vm0, %v420_v62, %v422_v43  ;;  %v2762_v62 = vld [vmem:[%s4061_s2 + $0x164] ss:$16 sps:$4 sm:$0xff]  }
 0x16d   : > { %1640 = vmatpush1.bf16.msra.mxu0 %v439_v63  ;;  %2618 = vmatpush1.bf16.msra.mxu1 %v439_v63  ;;  %v2764_v63 = vld [vmem:[%s4061_s2 + $0xac] ss:$16 sps:$4 sm:$0xff]  }
 0x16e   : > { %1641 = vmatprep.subr.bf16.mxu0 %v2999_v7  ;;  %2603 = vmatprep.subr.bf16.mxu1 %v2999_v7 }
 0x16f   : > { %v424_v2 = vpop.permute.xlu0 %423 }
 0x170   : > { %v473_v1 = vpop.permute.xlu1 %472  ;;  %v440_v4 = vsel %vm431_vm0, %v424_v2, %v426_v50  ;;  %1389 = vmatmul.mubr.bf16.gmra.mrb[4].mxu0 %v2725_v0  ;;  %v2766_v0 = vld [vmem:[%s4061_s2 + $0x160] ss:$16 sps:$4 sm:$0xff]   ;;  %v2768_v2 = vld [vmem:[%s4061_s2 + $0x184] ss:$16 sps:$4 sm:$0xff]  }
 0x171   : > { %1642 = vmatpush1.bf16.msra.mxu0 %v440_v4  ;;  %2619 = vmatpush1.bf16.msra.mxu1 %v440_v4  ;;  %v2772_v4 = vld [vmem:[%s4061_s2 + $0x180] ss:$16 sps:$4 sm:$0xff]  }
 0x172   : > { %1643 = vmatprep.subr.bf16.mxu0 %v2999_v7  ;;  %2604 = vmatprep.subr.bf16.mxu1 %v2999_v7 }
 0x173   : > { %v428_v6 = vpop.permute.xlu0 %427  ;;  %1396 = vmatprep.mubr.bf16.mxu0 %v2726_v3  ;;  %v2770_v3 = vld [vmem:[%s4061_s2 + $0xcc] ss:$16 sps:$4 sm:$0xff]  }
 0x174   : > { %v477_v5 = vpop.permute.xlu1 %476  ;;  %v441_v8 = vsel %vm431_vm0, %v428_v6, %v430_v53  ;;  %v2746_v53 = vld [vmem:[%s4061_s2 + $0x48] ss:$16 sps:$4 sm:$0xff]   ;;  %v2774_v6 = vld [vmem:[%s4061_s2 + $0x1a4] ss:$16 sps:$4 sm:$0xff]  }
 0x175   : > { %1644 = vmatpush1.bf16.msra.mxu0 %v441_v8  ;;  %2620 = vmatpush1.bf16.msra.mxu1 %v441_v8  ;;  %v2776_v8 = vld [vmem:[%s4061_s2 + $0xec] ss:$16 sps:$4 sm:$0xff]  }
 0x176   : > { %1645 = vmatprep.subr.bf16.mxu0 %v2999_v7  ;;  %2605 = vmatprep.subr.bf16.mxu1 %v2999_v7 }
 0x177   : > { %v463_v10 = vpop.permute.xlu0 %462 }
 0x178   : > { %v503_v12 = vsel %vm502_vm1, %v463_v10, %v465_v57  ;;  %1397 = vmatmul.mubr.bf16.gmra.mrb[8].mxu0 %v2728_v9  ;;  %v481_v13 = vpop.permute.xlu1 %480  ;;  %v2755_v57 = vld [vmem:[%s4061_s2 + $0x68] ss:$16 sps:$4 sm:$0xff]   ;;  %v2778_v9 = vld [vmem:[%s4061_s2 + $0x1a0] ss:$16 sps:$4 sm:$0xff]  }
 0x179   : > { %1646 = vmatpush1.bf16.msra.mxu0 %v503_v12  ;;  %2621 = vmatpush1.bf16.msra.mxu1 %v503_v12  ;;  %v2779_v10 = vld [vmem:[%s4061_s2 + $0xe8] ss:$16 sps:$4 sm:$0xff]   ;;  %v2782_v12 = vld [vmem:[%s4061_s2 + $0x10c] ss:$16 sps:$4 sm:$0xff]  }
 0x17a   : > { %1647 = vmatprep.subr.bf16.mxu0 %v2999_v7  ;;  %2606 = vmatprep.subr.bf16.mxu1 %v2999_v7 }
 0x17b   : > { %v467_v14 = vpop.permute.xlu0 %466  ;;  %1404 = vmatprep.mubr.bf16.mxu0 %v2729_v11  ;;  %v2780_v11 = vld [vmem:[%s4061_s2 + $0x1c4] ss:$16 sps:$4 sm:$0xff]  }
 0x17c   : > { %v504_v15 = vsel %vm502_vm1, %v467_v14, %v469_v61  ;;  %v485_v17 = vpop.permute.xlu1 %484  ;;  %v2761_v61 = vld [vmem:[%s4061_s2 + $0x88] ss:$16 sps:$4 sm:$0xff]  }
 0x17d   : > { %1648 = vmatpush1.bf16.msra.mxu0 %v504_v15  ;;  %2622 = vmatpush1.bf16.msra.mxu1 %v504_v15  ;;  %v2785_v14 = vld [vmem:[%s4061_s2 + $0x108] ss:$16 sps:$4 sm:$0xff]   ;;  %v2786_v15 = vld [vmem:[%s4061_s2 + $0x1e4] ss:$16 sps:$4 sm:$0xff]  }
 0x17e   : > { %1649 = vmatprep.subr.bf16.mxu0 %v2999_v7  ;;  %2607 = vmatprep.subr.bf16.mxu1 %v2999_v7 }
 0x17f   : > { %v471_v18 = vpop.permute.xlu0 %470 }
 0x180   : > { %v505_v20 = vsel %vm502_vm1, %v471_v18, %v473_v1  ;;  %1405 = vmatmul.mubr.bf16.gmra.mrb[12].mxu0 %v2731_v16  ;;  %v489_v24 = vpop.permute.xlu1 %488  ;;  %v2767_v1 = vld [vmem:[%s4061_s2 + $0xa8] ss:$16 sps:$4 sm:$0xff]   ;;  %v2788_v16 = vld [vmem:[%s4061_s2 + $0x12c] ss:$16 sps:$4 sm:$0xff]  }
 0x181   : > { %1650 = vmatpush1.bf16.msra.mxu0 %v505_v20  ;;  %2623 = vmatpush1.bf16.msra.mxu1 %v505_v20  ;;  %v2791_v18 = vld [vmem:[%s4061_s2 + $0x128] ss:$16 sps:$4 sm:$0xff]   ;;  %v2794_v20 = vld [vmem:[%s4061_s2 + $0x14c] ss:$16 sps:$4 sm:$0xff]  }
 0x182   : > { %1651 = vmatprep.subr.bf16.mxu0 %v2999_v7  ;;  %2608 = vmatprep.subr.bf16.mxu1 %v2999_v7 }
 0x183   : > { %v475_v21 = vpop.permute.xlu0 %474  ;;  %1412 = vmatprep.mubr.bf16.mxu0 %v2732_v19  ;;  %v2792_v19 = vld [vmem:[%s4061_s2 + $0x204] ss:$16 sps:$4 sm:$0xff]  }
 0x184   : > { %v506_v22 = vsel %vm502_vm1, %v475_v21, %v477_v5  ;;  %v493_v28 = vpop.permute.xlu1 %492  ;;  %v2773_v5 = vld [vmem:[%s4061_s2 + $0xc8] ss:$16 sps:$4 sm:$0xff]   ;;  %v2796_v21 = vld [vmem:[%s4061_s2 + $0x200] ss:$16 sps:$4 sm:$0xff]  }
 0x185   : > { %1652 = vmatpush1.bf16.msra.mxu0 %v506_v22  ;;  %2624 = vmatpush1.bf16.msra.mxu1 %v506_v22  ;;  %v2797_v22 = vld [vmem:[%s4061_s2 + $0x148] ss:$16 sps:$4 sm:$0xff]  }
 0x186   : > { %1653 = vmatprep.subr.bf16.mxu0 %v2999_v7  ;;  %2609 = vmatprep.subr.bf16.mxu1 %v2999_v7 }
 0x187   : > { %v479_v25 = vpop.permute.xlu0 %478 }
 0x188   : > { %v507_v27 = vsel %vm502_vm1, %v479_v25, %v481_v13  ;;  %1413 = vmatmul.mubr.bf16.gmra.mrb[16].mxu0 %v2734_v23  ;;  %v497_v35 = vpop.permute.xlu1 %496  ;;  %v2784_v13 = vld [vmem:[%s4061_s2 + $0x1c0] ss:$16 sps:$4 sm:$0xff]   ;;  %v2798_v23 = vld [vmem:[%s4061_s2 + $0x224] ss:$16 sps:$4 sm:$0xff]  }
 0x189   : > { %1654 = vmatpush1.bf16.msra.mxu0 %v507_v27  ;;  %2625 = vmatpush1.bf16.msra.mxu1 %v507_v27  ;;  %v2802_v25 = vld [vmem:[%s4061_s2 + $0x220] ss:$16 sps:$4 sm:$0xff]   ;;  %v2804_v27 = vld [vmem:[%s4061_s2 + $0x244] ss:$16 sps:$4 sm:$0xff]  }
 0x18a   : > { %1655 = vmatprep.subr.bf16.mxu0 %v2999_v7  ;;  %2610 = vmatprep.subr.bf16.mxu1 %v2999_v7 }
 0x18b   : > { %v483_v29 = vpop.permute.xlu0 %482  ;;  %1420 = vmatprep.mubr.bf16.mxu0 %v2735_v26  ;;  %v2803_v26 = vld [vmem:[%s4061_s2 + $0x168] ss:$16 sps:$4 sm:$0xff]  }
 0x18c   : > { %v508_v30 = vsel %vm502_vm1, %v483_v29, %v485_v17  ;;  %v501_v39 = vpop.permute.xlu1 %500  ;;  %v2790_v17 = vld [vmem:[%s4061_s2 + $0x1e0] ss:$16 sps:$4 sm:$0xff]  }
 0x18d   : > { %1656 = vmatpush1.bf16.msra.mxu0 %v508_v30  ;;  %2626 = vmatpush1.bf16.msra.mxu1 %v508_v30  ;;  %v2808_v29 = vld [vmem:[%s4061_s2 + $0x240] ss:$16 sps:$4 sm:$0xff]   ;;  %v2809_v30 = vld [vmem:[%s4061_s2 + $0x188] ss:$16 sps:$4 sm:$0xff]  }
 0x18e   : > { %1657 = vmatprep.subr.bf16.mxu0 %v2999_v7  ;;  %2611 = vmatprep.subr.bf16.mxu1 %v2999_v7 }
 0x18f   : > { %v487_v32 = vpop.permute.xlu0 %486 }
 0x190   : > { %v509_v34 = vsel %vm502_vm1, %v487_v32, %v489_v24  ;;  %1421 = vmatmul.mubr.bf16.gmra.mrb[20].mxu0 %v2737_v31  ;;  %v536_v45 = vpop.permute.xlu1 %535  ;;  %v2800_v24 = vld [vmem:[%s4061_s2 + $0x16c] ss:$16 sps:$4 sm:$0xff]   ;;  %v2810_v31 = vld [vmem:[%s4061_s2 + $0x264] ss:$16 sps:$4 sm:$0xff]  }
 0x191   : > { %1658 = vmatpush1.bf16.msra.mxu0 %v509_v34  ;;  %2627 = vmatpush1.bf16.msra.mxu1 %v509_v34  ;;  %v2812_v32 = vld [vmem:[%s4061_s2 + $0x1ac] ss:$16 sps:$4 sm:$0xff]   ;;  %v2815_v34 = vld [vmem:[%s4061_s2 + $0x1a8] ss:$16 sps:$4 sm:$0xff]  }
 0x192   : > { %1659 = vmatprep.subr.bf16.mxu0 %v2999_v7  ;;  %2612 = vmatprep.subr.bf16.mxu1 %v2999_v7 }
 0x193   : > { %v491_v36 = vpop.permute.xlu0 %490  ;;  %1428 = vmatprep.mubr.bf16.mxu0 %v2738_v33  ;;  %v2814_v33 = vld [vmem:[%s4061_s2 + $0x260] ss:$16 sps:$4 sm:$0xff]  }
 0x194   : > { %v510_v37 = vsel %vm502_vm1, %v491_v36, %v493_v28  ;;  %v540_v50 = vpop.permute.xlu1 %539  ;;  %v2806_v28 = vld [vmem:[%s4061_s2 + $0x18c] ss:$16 sps:$4 sm:$0xff]  }
 0x195   : > { %1660 = vmatpush1.bf16.msra.mxu0 %v510_v37  ;;  %2628 = vmatpush1.bf16.msra.mxu1 %v510_v37  ;;  %v2818_v36 = vld [vmem:[%s4061_s2 + $0x1cc] ss:$16 sps:$4 sm:$0xff]   ;;  %v2820_v37 = vld [vmem:[%s4061_s2 + $0x280] ss:$16 sps:$4 sm:$0xff]  }
 0x196   : > { %1661 = vmatprep.subr.bf16.mxu0 %v2999_v7  ;;  %2613 = vmatprep.subr.bf16.mxu1 %v2999_v7 }
 0x197   : > { %v495_v41 = vpop.permute.xlu0 %494 }
 0x198   : > { %v511_v43 = vsel %vm502_vm1, %v495_v41, %v497_v35  ;;  %1429 = vmatmul.mubr.bf16.gmra.mrb[24].mxu0 %v2740_v38  ;;  %v2816_v35 = vld [vmem:[%s4061_s2 + $0x284] ss:$16 sps:$4 sm:$0xff]   ;;  %v2821_v38 = vld [vmem:[%s4061_s2 + $0x1c8] ss:$16 sps:$4 sm:$0xff]   ;;  %v2824_v41 = vld [vmem:[%s4061_s2 + $0x1ec] ss:$16 sps:$4 sm:$0xff]  }
 0x199   : > { %1662 = vmatpush1.bf16.msra.mxu0 %v511_v43  ;;  %2629 = vmatpush1.bf16.msra.mxu1 %v511_v43  ;;  %v2827_v43 = vld [vmem:[%s4061_s2 + $0x1e8] ss:$16 sps:$4 sm:$0xff]  }
 0x19a   : > { %1663 = vmatprep.subr.bf16.mxu0 %v2999_v7  ;;  %2614 = vmatprep.subr.bf16.mxu1 %v2999_v7 }
 0x19b   : > { %v499_v44 = vpop.permute.xlu0 %498  ;;  %1436 = vmatprep.mubr.bf16.mxu0 %v2741_v42  ;;  %v2826_v42 = vld [vmem:[%s4061_s2 + $0x2a0] ss:$16 sps:$4 sm:$0xff]  }
 0x19c   : > { %v512_v46 = vsel %vm502_vm1, %v499_v44, %v501_v39  ;;  %v2822_v39 = vld [vmem:[%s4061_s2 + $0x2a4] ss:$16 sps:$4 sm:$0xff]  }
 0x19d   : > { %1664 = vmatpush1.bf16.msra.mxu0 %v512_v46  ;;  %2630 = vmatpush1.bf16.msra.mxu1 %v512_v46  ;;  %v2828_v44 = vld [vmem:[%s4061_s2 + $0x2c4] ss:$16 sps:$4 sm:$0xff]   ;;  %v2830_v46 = vld [vmem:[%s4061_s2 + $0x20c] ss:$16 sps:$4 sm:$0xff]  }
 0x19e   : > { %1665 = vmatprep.subr.bf16.mxu0 %v2999_v7  ;;  %2615 = vmatprep.subr.bf16.mxu1 %v2999_v7 }
 0x19f   : > { %v534_v47 = vpop.permute.xlu0 %533 }
 0x1a0   : > { %v542_v49 = vsel %vm541_vm2, %v534_v47, %v536_v45  ;;  %1437 = vmatmul.mubr.bf16.gmra.mrb[28].mxu0 %v2743_v40  ;;  %v2832_v40 = vld [vmem:[%s4061_s2 + $0x2c0] ss:$16 sps:$4 sm:$0xff]   ;;  %v2833_v45 = vld [vmem:[%s4061_s2 + $0x208] ss:$16 sps:$4 sm:$0xff]   ;;  %v2834_v47 = vld [vmem:[%s4061_s2 + $0x2e4] ss:$16 sps:$4 sm:$0xff]  }
 0x1a1   : > { %1666 = vmatpush1.bf16.msra.mxu0 %v542_v49  ;;  %2631 = vmatpush1.bf16.msra.mxu1 %v542_v49  ;;  %v2838_v49 = vld [vmem:[%s4061_s2 + $0x2e0] ss:$16 sps:$4 sm:$0xff]  }
 0x1a2   : > { %1667 = vmatprep.subr.bf16.mxu0 %v2999_v7  ;;  %2616 = vmatprep.subr.bf16.mxu1 %v2999_v7  ;;  %v2752_v7 = vld [vmem:[%s4061_s2 + $0x6c] ss:$16 sps:$4 sm:$0xff]  }
 0x1a3   : > { %v538_v51 = vpop.permute.xlu0 %537  ;;  %1444 = vmatprep.mubr.bf16.mxu0 %v2744_v48  ;;  %v2836_v48 = vld [vmem:[%s4061_s2 + $0x22c] ss:$16 sps:$4 sm:$0xff]  }
 0x1a4   : > { %v543_v52 = vsel %vm541_vm2, %v538_v51, %v540_v50  ;;  %v2839_v50 = vld [vmem:[%s4061_s2 + $0x228] ss:$16 sps:$4 sm:$0xff]   ;;  %v2840_v51 = vld [vmem:[%s4061_s2 + $0x304] ss:$16 sps:$4 sm:$0xff]  }
 0x1a5   : > { %1668 = vmatpush1.bf16.msra.mxu0 %v543_v52  ;;  %2632 = vmatpush1.bf16.msra.mxu1 %v543_v52  ;;  %v2842_v52 = vld [vmem:[%s4061_s2 + $0x24c] ss:$16 sps:$4 sm:$0xff]  }
 0x1a8   : > { %1445 = vmatmul.mubr.bf16.gmra.mrb[32].mxu0 %v2749_v54  ;;  %1686 = vmatmul.mubr.bf16.vlgmr.msra.gmra.mrb[0].mxu1 %v2746_v53  ;;  %v2844_v53 = vld [vmem:[%s4061_s2 + $0x300] ss:$16 sps:$4 sm:$0xff]   ;;  %v2845_v54 = vld [vmem:[%s4061_s2 + $0x248] ss:$16 sps:$4 sm:$0xff]  }
 0x1a9   : > { %1452 = vmatprep.mubr.bf16.mxu0 %v2750_v55  ;;  %1693 = vmatprep.mubr.bf16.mxu1 %v2752_v7  ;;  %v2846_v55 = vld [vmem:[%s4061_s2 + $0x324] ss:$16 sps:$4 sm:$0xff]   ;;  %v2848_v7 = vld [vmem:[%s4061_s2 + $0x26c] ss:$16 sps:$4 sm:$0xff]  }
 0x1b0   : > { %1453 = vmatmul.mubr.bf16.gmra.mrb[36].mxu0 %v2754_v56  ;;  %1694 = vmatmul.mubr.bf16.gmra.mrb[4].mxu1 %v2755_v57  ;;  %v2850_v56 = vld [vmem:[%s4061_s2 + $0x320] ss:$16 sps:$4 sm:$0xff]   ;;  %v2851_v57 = vld [vmem:[%s4061_s2 + $0x268] ss:$16 sps:$4 sm:$0xff]  }
 0x1b1   : > { %1460 = vmatprep.mubr.bf16.mxu0 %v2756_v58  ;;  %1701 = vmatprep.mubr.bf16.mxu1 %v2758_v59  ;;  %v2852_v58 = vld [vmem:[%s4061_s2 + $0x344] ss:$16 sps:$4 sm:$0xff]   ;;  %v2854_v59 = vld [vmem:[%s4061_s2 + $0x28c] ss:$16 sps:$4 sm:$0xff]  }
 0x1b8   : > { %1461 = vmatmul.mubr.bf16.gmra.mrb[40].mxu0 %v2760_v60  ;;  %1702 = vmatmul.mubr.bf16.gmra.mrb[8].mxu1 %v2761_v61  ;;  %v2856_v60 = vld [vmem:[%s4061_s2 + $0x340] ss:$16 sps:$4 sm:$0xff]   ;;  %v2857_v61 = vld [vmem:[%s4061_s2 + $0x288] ss:$16 sps:$4 sm:$0xff]  }
 0x1b9   : > { %1468 = vmatprep.mubr.bf16.mxu0 %v2762_v62  ;;  %1709 = vmatprep.mubr.bf16.mxu1 %v2764_v63  ;;  %v2858_v62 = vld [vmem:[%s4061_s2 + $0x364] ss:$16 sps:$4 sm:$0xff]   ;;  %v2860_v63 = vld [vmem:[%s4061_s2 + $0x2ac] ss:$16 sps:$4 sm:$0xff]  }
 0x1c0   : > { %1469 = vmatmul.mubr.bf16.gmra.mrb[44].mxu0 %v2766_v0  ;;  %1710 = vmatmul.mubr.bf16.gmra.mrb[12].mxu1 %v2767_v1  ;;  %v2862_v0 = vld [vmem:[%s4061_s2 + $0x360] ss:$16 sps:$4 sm:$0xff]   ;;  %v2863_v1 = vld [vmem:[%s4061_s2 + $0x2a8] ss:$16 sps:$4 sm:$0xff]  }
 0x1c1   : > { %1476 = vmatprep.mubr.bf16.mxu0 %v2768_v2  ;;  %1717 = vmatprep.mubr.bf16.mxu1 %v2770_v3  ;;  %v2864_v2 = vld [vmem:[%s4061_s2 + $0x384] ss:$16 sps:$4 sm:$0xff]   ;;  %v2866_v3 = vld [vmem:[%s4061_s2 + $0x2cc] ss:$16 sps:$4 sm:$0xff]  }
 0x1c8   : > { %1477 = vmatmul.mubr.bf16.gmra.mrb[48].mxu0 %v2772_v4  ;;  %1718 = vmatmul.mubr.bf16.gmra.mrb[16].mxu1 %v2773_v5  ;;  %v2868_v4 = vld [vmem:[%s4061_s2 + $0x380] ss:$16 sps:$4 sm:$0xff]   ;;  %v2869_v5 = vld [vmem:[%s4061_s2 + $0x2c8] ss:$16 sps:$4 sm:$0xff]  }
 0x1c9   : > { %1484 = vmatprep.mubr.bf16.mxu0 %v2774_v6  ;;  %1725 = vmatprep.mubr.bf16.mxu1 %v2776_v8  ;;  %v2870_v6 = vld [vmem:[%s4061_s2 + $0x3a4] ss:$16 sps:$4 sm:$0xff]   ;;  %v2872_v8 = vld [vmem:[%s4061_s2 + $0x2ec] ss:$16 sps:$4 sm:$0xff]  }
 0x1d0   : > { %1485 = vmatmul.mubr.bf16.gmra.mrb[52].mxu0 %v2778_v9  ;;  %1726 = vmatmul.mubr.bf16.gmra.mrb[20].mxu1 %v2779_v10 }
 0x1d1   : > { %1492 = vmatprep.mubr.bf16.mxu0 %v2780_v11  ;;  %1733 = vmatprep.mubr.bf16.mxu1 %v2782_v12  ;;  %v2874_v11 = vld [vmem:[%s4061_s2 + $0x3a0] ss:$16 sps:$4 sm:$0xff]   ;;  %v2875_v12 = vld [vmem:[%s4061_s2 + $0x2e8] ss:$16 sps:$4 sm:$0xff]  }
 0x1d8   : > { %1493 = vmatmul.mubr.bf16.gmra.mrb[56].mxu0 %v2784_v13  ;;  %1734 = vmatmul.mubr.bf16.gmra.mrb[24].mxu1 %v2785_v14  ;;  %v2876_v14 = vld [vmem:[%s4061_s2 + $0x3c4] ss:$16 sps:$4 sm:$0xff]  }
 0x1d9   : > { %1500 = vmatprep.mubr.bf16.mxu0 %v2786_v15  ;;  %1741 = vmatprep.mubr.bf16.mxu1 %v2788_v16  ;;  %v2878_v15 = vld [vmem:[%s4061_s2 + $0x30c] ss:$16 sps:$4 sm:$0xff]  }
 0x1e0   : > { %1501 = vmatmul.mubr.bf16.gmra.mrb[60].mxu0 %v2790_v17  ;;  %1742 = vmatmul.mubr.bf16.gmra.mrb[28].mxu1 %v2791_v18 }
 0x1e1   : > { %1508 = vmatprep.mubr.bf16.mxu0 %v2792_v19  ;;  %1749 = vmatprep.mubr.bf16.mxu1 %v2794_v20  ;;  %v2880_v19 = vld [vmem:[%s4061_s2 + $0x3c0] ss:$16 sps:$4 sm:$0xff]   ;;  %v2881_v20 = vld [vmem:[%s4061_s2 + $0x308] ss:$16 sps:$4 sm:$0xff]  }
 0x1e8   : > { %1509 = vmatmul.mubr.bf16.gmra.mrb[64].mxu0 %v2796_v21  ;;  %1750 = vmatmul.mubr.bf16.gmra.mrb[32].mxu1 %v2797_v22  ;;  %v2882_v22 = vld [vmem:[%s4061_s2 + $0x3e4] ss:$16 sps:$4 sm:$0xff]  }
 0x1e9   : > { %1516 = vmatprep.mubr.bf16.mxu0 %v2798_v23  ;;  %1757 = vmatprep.mubr.bf16.mxu1 %v2800_v24  ;;  %v2884_v23 = vld [vmem:[%s4061_s2 + $0x32c] ss:$16 sps:$4 sm:$0xff]  }
 0x1f0   : > { %1517 = vmatmul.mubr.bf16.gmra.mrb[68].mxu0 %v2802_v25  ;;  %1758 = vmatmul.mubr.bf16.gmra.mrb[36].mxu1 %v2803_v26 }
 0x1f1   : > { %1524 = vmatprep.mubr.bf16.mxu0 %v2804_v27  ;;  %1765 = vmatprep.mubr.bf16.mxu1 %v2806_v28  ;;  %v2886_v27 = vld [vmem:[%s4061_s2 + $0x3e0] ss:$16 sps:$4 sm:$0xff]   ;;  %v2887_v28 = vld [vmem:[%s4061_s2 + $0x328] ss:$16 sps:$4 sm:$0xff]  }
 0x1f8   : > { %1525 = vmatmul.mubr.bf16.gmra.mrb[72].mxu0 %v2808_v29  ;;  %1766 = vmatmul.mubr.bf16.gmra.mrb[40].mxu1 %v2809_v30  ;;  %v2890_v30 = vld [vmem:[%s4061_s2 + $0xc] ss:$16 sps:$4 sm:$0xff]  }
 0x1f9   : > { %1532 = vmatprep.mubr.bf16.mxu0 %v2810_v31  ;;  %1773 = vmatprep.mubr.bf16.mxu1 %v2812_v32  ;;  %v2891_v31 = vld [vmem:[%s4061_s2 + $0x34c] ss:$16 sps:$4 sm:$0xff]  }
 0x200   : > { %1533 = vmatmul.mubr.bf16.gmra.mrb[76].mxu0 %v2814_v33  ;;  %1774 = vmatmul.mubr.bf16.gmra.mrb[44].mxu1 %v2815_v34 }
 0x201   : > { %1540 = vmatprep.mubr.bf16.mxu0 %v2816_v35  ;;  %1781 = vmatprep.mubr.bf16.mxu1 %v2818_v36  ;;  %v2888_v35 = vld [vmem:[%s4061_s2 + $0x8] ss:$16 sps:$4 sm:$0xff]  }
 0x202   : > { %v2893_v36 = vld [vmem:[%s4061_s2 + $0x348] ss:$16 sps:$4 sm:$0xff]  }
 0x208   : > { %1541 = vmatmul.mubr.bf16.gmra.mrb[80].mxu0 %v2820_v37  ;;  %1782 = vmatmul.mubr.bf16.gmra.mrb[48].mxu1 %v2821_v38  ;;  %v2894_v38 = vld [vmem:[%s4061_s2 + $0x2c] ss:$16 sps:$4 sm:$0xff]  }
 0x209   : > { %1548 = vmatprep.mubr.bf16.mxu0 %v2822_v39  ;;  %1789 = vmatprep.mubr.bf16.mxu1 %v2824_v41  ;;  %v2896_v39 = vld [vmem:[%s4061_s2 + $0x36c] ss:$16 sps:$4 sm:$0xff]  }
 0x210   : > { %1549 = vmatmul.mubr.bf16.gmra.mrb[84].mxu0 %v2826_v42  ;;  %1790 = vmatmul.mubr.bf16.gmra.mrb[52].mxu1 %v2827_v43 }
 0x211   : > { %1556 = vmatprep.mubr.bf16.mxu0 %v2828_v44  ;;  %1797 = vmatprep.mubr.bf16.mxu1 %v2830_v46  ;;  %v2898_v44 = vld [vmem:[%s4061_s2 + $0x28] ss:$16 sps:$4 sm:$0xff]  }
 0x212   : > { %v2899_v46 = vld [vmem:[%s4061_s2 + $0x368] ss:$16 sps:$4 sm:$0xff]  }
 0x218   : > { %1557 = vmatmul.mubr.bf16.gmra.mrb[88].mxu0 %v2832_v40  ;;  %1798 = vmatmul.mubr.bf16.gmra.mrb[56].mxu1 %v2833_v45  ;;  %v2900_v45 = vld [vmem:[%s4061_s2 + $0x38c] ss:$16 sps:$4 sm:$0xff]  }
 0x219   : > { %1564 = vmatprep.mubr.bf16.mxu0 %v2834_v47  ;;  %1805 = vmatprep.mubr.bf16.mxu1 %v2836_v48 }
 0x220   : > { %1565 = vmatmul.mubr.bf16.gmra.mrb[92].mxu0 %v2838_v49  ;;  %1806 = vmatmul.mubr.bf16.gmra.mrb[60].mxu1 %v2839_v50  ;;  %v2902_v50 = vld [vmem:[%s4061_s2 + $0x388] ss:$16 sps:$4 sm:$0xff]  }
 0x221   : > { %1572 = vmatprep.mubr.bf16.mxu0 %v2840_v51  ;;  %1813 = vmatprep.mubr.bf16.mxu1 %v2842_v52  ;;  %v2903_v52 = vld [vmem:[%s4061_s2 + $0x3ac] ss:$16 sps:$4 sm:$0xff]  }
 0x228   : > { %1573 = vmatmul.mubr.bf16.gmra.mrb[96].mxu0 %v2844_v53  ;;  %1814 = vmatmul.mubr.bf16.gmra.mrb[64].mxu1 %v2845_v54 }
 0x229   : > { %1580 = vmatprep.mubr.bf16.mxu0 %v2846_v55  ;;  %1821 = vmatprep.mubr.bf16.mxu1 %v2848_v7 }
 0x230   : > { %1581 = vmatmul.mubr.bf16.gmra.mrb[100].mxu0 %v2850_v56  ;;  %1822 = vmatmul.mubr.bf16.gmra.mrb[68].mxu1 %v2851_v57 }
 0x231   : > { %1588 = vmatprep.mubr.bf16.mxu0 %v2852_v58  ;;  %1829 = vmatprep.mubr.bf16.mxu1 %v2854_v59  ;;  %v2905_v58 = vld [vmem:[%s4061_s2 + $0x3a8] ss:$16 sps:$4 sm:$0xff]  }
 0x238   : > { %1589 = vmatmul.mubr.bf16.gmra.mrb[104].mxu0 %v2856_v60  ;;  %1830 = vmatmul.mubr.bf16.gmra.mrb[72].mxu1 %v2857_v61  ;;  %v2906_v61 = vld [vmem:[%s4061_s2 + $0x3cc] ss:$16 sps:$4 sm:$0xff]  }
 0x239   : > { %1596 = vmatprep.mubr.bf16.mxu0 %v2858_v62  ;;  %1837 = vmatprep.mubr.bf16.mxu1 %v2860_v63 }
 0x240   : > { %1597 = vmatmul.mubr.bf16.gmra.mrb[108].mxu0 %v2862_v0  ;;  %1838 = vmatmul.mubr.bf16.gmra.mrb[76].mxu1 %v2863_v1 }
 0x241   : > { %1604 = vmatprep.mubr.bf16.mxu0 %v2864_v2  ;;  %1845 = vmatprep.mubr.bf16.mxu1 %v2866_v3 }
 0x248   : > { %1605 = vmatmul.mubr.bf16.gmra.mrb[112].mxu0 %v2868_v4  ;;  %1846 = vmatmul.mubr.bf16.gmra.mrb[80].mxu1 %v2869_v5 }
 0x249   : > { %1612 = vmatprep.mubr.bf16.mxu0 %v2870_v6  ;;  %1853 = vmatprep.mubr.bf16.mxu1 %v2872_v8  ;;  %v2908_v6 = vld [vmem:[%s4061_s2 + $0x3c8] ss:$16 sps:$4 sm:$0xff]  }
 0x24b   : > { %v3533_v9 = vpop.f32.mrb[8].mxu0 }
 0x24c   : > { %v1400_v10 = vpop.f32.mrb[9].mxu0 }
 0x24d   : > { %v3541_v13 = vpop.f32.mrb[10].mxu0  ;;  %v2909_v10 = vld [vmem:[%s4061_s2 + $0x3ec] ss:$16 sps:$4 sm:$0xff]  }
 0x24e   : > { %v1403_v16 = vpop.f32.mrb[11].mxu0 }
 0x250   : > { %1613 = vmatmul.mubr.bf16.gmra.mrb[116].mxu0 %v2874_v11  ;;  %1854 = vmatmul.mubr.bf16.gmra.mrb[84].mxu1 %v2875_v12 }
 0x251   : > { %1620 = vmatprep.mubr.bf16.mxu0 %v2876_v14  ;;  %1861 = vmatprep.mubr.bf16.mxu1 %v2878_v15 }
 0x253   : > { %v3549_v17 = vpop.f32.mrb[12].mxu0 }
 0x254   : > { %v1408_v18 = vpop.f32.mrb[13].mxu0 }
 0x255   : > { %v3557_v21 = vpop.f32.mrb[14].mxu0 }
 0x256   : > { %v1411_v24 = vpop.f32.mrb[15].mxu0 }
 0x258   : > { %1621 = vmatmul.mubr.bf16.gmra.mrb[120].mxu0 %v2880_v19  ;;  %1862 = vmatmul.mubr.bf16.gmra.mrb[88].mxu1 %v2881_v20  ;;  %v2911_v19 = vld [vmem:[%s4061_s2 + $0x3e8] ss:$16 sps:$4 sm:$0xff]  }
 0x259   : > { %1628 = vmatprep.mubr.bf16.mxu0 %v2882_v22  ;;  %1869 = vmatprep.mubr.bf16.mxu1 %v2884_v23 }
 0x25b   : > { %v3565_v25 = vpop.f32.mrb[16].mxu0 }
 0x25c   : > { %v1416_v26 = vpop.f32.mrb[17].mxu0 }
 0x25d   : > { %v3573_v29 = vpop.f32.mrb[18].mxu0 }
 0x25e   : > { %v1419_v32 = vpop.f32.mrb[19].mxu0 }
 0x260   : > { %1629 = vmatmul.mubr.bf16.gmra.mrb[124].mxu0 %v2886_v27  ;;  %1870 = vmatmul.mubr.bf16.gmra.mrb[92].mxu1 %v2887_v28 }
 0x261   : > { %1669 = vmatprep.mubr.bf16.mxu0 %v2890_v30  ;;  %1877 = vmatprep.mubr.bf16.mxu1 %v2891_v31 }
 0x263   : > { %v3581_v33 = vpop.f32.mrb[20].mxu0 }
 0x264   : > { %v1424_v34 = vpop.f32.mrb[21].mxu0 }
 0x265   : > { %v3589_v37 = vpop.f32.mrb[22].mxu0 }
 0x266   : > { %v1427_v41 = vpop.f32.mrb[23].mxu0 }
 0x268   : > { %1670 = vmatmul.mubr.bf16.vlgmr.msra.gmra.mrb[0].mxu0 %v2888_v35  ;;  %1878 = vmatmul.mubr.bf16.gmra.mrb[96].mxu1 %v2893_v36 }
 0x269   : > { %1677 = vmatprep.mubr.bf16.mxu0 %v2894_v38  ;;  %1885 = vmatprep.mubr.bf16.mxu1 %v2896_v39 }
 0x26b   : > { %v3597_v42 = vpop.f32.mrb[24].mxu0 }
 0x26c   : > { %v1432_v43 = vpop.f32.mrb[25].mxu0 }
 0x26d   : > { %v3605_v40 = vpop.f32.mrb[26].mxu0 }
 0x26e   : > { %v1435_v47 = vpop.f32.mrb[27].mxu0 }
 0x270   : > { %1678 = vmatmul.mubr.bf16.gmra.mrb[4].mxu0 %v2898_v44  ;;  %1886 = vmatmul.mubr.bf16.gmra.mrb[100].mxu1 %v2899_v46 }
 0x271   : > { %1893 = vmatprep.mubr.bf16.mxu1 %v2900_v45 }
 0x273   : > { %v3610_v48 = vpop.f32.mrb[28].mxu0 }
 0x274   : > { %v1440_v49 = vpop.f32.mrb[29].mxu0 }
 0x275   : > { %v3615_v51 = vpop.f32.mrb[30].mxu0 }
 0x276   : > { %v1443_v53 = vpop.f32.mrb[31].mxu0 }
 0x278   : > { %1894 = vmatmul.mubr.bf16.gmra.mrb[104].mxu1 %v2902_v50 }
 0x279   : > { %1901 = vmatprep.mubr.bf16.mxu1 %v2903_v52 }
 0x27b   : > { %v3620_v54 = vpop.f32.mrb[32].mxu0  ;;  %v1687_v55 = vpop.f32.mrb[0].mxu1 }
 0x27c   : > { %v3623_v7 = vadd.f32 %v1687_v55, %v3533_v9  ;;  %v1448_v56 = vpop.f32.mrb[33].mxu0  ;;  %v1689_v57 = vpop.f32.mrb[1].mxu1 }
 0x27d   : > { %v3628_v59 = vpop.f32.mrb[34].mxu0  ;;  %v1690_v60 = vpop.f32.mrb[2].mxu1 }
 0x27e   : > { %v3634_v62 = vadd.f32 %v1690_v60, %v3541_v13  ;;  %v1451_v63 = vpop.f32.mrb[35].mxu0  ;;  %v1692_v0 = vpop.f32.mrb[3].mxu1 }
 0x280   : > { %1902 = vmatmul.mubr.bf16.gmra.mrb[108].mxu1 %v2905_v58 }
 0x281   : > { %1909 = vmatprep.mubr.bf16.mxu1 %v2906_v61 }
 0x283   : > { %v3636_v1 = vpop.f32.mrb[36].mxu0  ;;  %v1695_v2 = vpop.f32.mrb[4].mxu1 }
 0x284   : > { %v3639_v3 = vadd.f32 %v1695_v2, %v3549_v17  ;;  %v1456_v4 = vpop.f32.mrb[37].mxu0  ;;  %v1697_v5 = vpop.f32.mrb[5].mxu1 }
 0x285   : > { %v3644_v8 = vpop.f32.mrb[38].mxu0  ;;  %v1698_v9 = vpop.f32.mrb[6].mxu1 }
 0x286   : > { %v3650_v11 = vadd.f32 %v1698_v9, %v3557_v21  ;;  %v1459_v12 = vpop.f32.mrb[39].mxu0  ;;  %v1700_v13 = vpop.f32.mrb[7].mxu1 }
 0x288   : > { %1910 = vmatmul.mubr.bf16.gmra.mrb[112].mxu1 %v2908_v6 }
 0x289   : > { %1917 = vmatprep.mubr.bf16.mxu1 %v2909_v10 }
 0x28b   : > { %v3652_v14 = vpop.f32.mrb[40].mxu0  ;;  %v1703_v15 = vpop.f32.mrb[8].mxu1 }
 0x28c   : > { %v3655_v16 = vadd.f32 %v1703_v15, %v3565_v25  ;;  %v1464_v17 = vpop.f32.mrb[41].mxu0  ;;  %v1705_v18 = vpop.f32.mrb[9].mxu1 }
 0x28d   : > { %v3660_v20 = vpop.f32.mrb[42].mxu0  ;;  %v1706_v21 = vpop.f32.mrb[10].mxu1 }
 0x28e   : > { %v3663_v22 = vadd.f32 %v1706_v21, %v3573_v29  ;;  %v1467_v23 = vpop.f32.mrb[43].mxu0  ;;  %v1708_v24 = vpop.f32.mrb[11].mxu1 }
 0x290   : > { %1918 = vmatmul.mubr.bf16.gmra.mrb[116].mxu1 %v2911_v19 }
 0x293   : > { %v1470_v26 = vpop.f32.mrb[44].mxu0  ;;  %v1711_v27 = vpop.f32.mrb[12].mxu1 }
 0x294   : > { %v3666_v25 = vadd.f32 %v1711_v27, %v3581_v33  ;;  %v1472_v28 = vpop.f32.mrb[45].mxu0  ;;  %v1713_v30 = vpop.f32.mrb[13].mxu1 }
 0x295   : > { %v1473_v31 = vpop.f32.mrb[46].mxu0  ;;  %v1714_v32 = vpop.f32.mrb[14].mxu1 }
 0x296   : > { %v3669_v34 = vadd.f32 %v1714_v32, %v3589_v37  ;;  %v1475_v35 = vpop.f32.mrb[47].mxu0  ;;  %v1716_v36 = vpop.f32.mrb[15].mxu1 }
 0x29b   : > { %v1478_v38 = vpop.f32.mrb[48].mxu0  ;;  %v1719_v29 = vpop.f32.mrb[16].mxu1 }
 0x29c   : > { %v3672_v39 = vadd.f32 %v1719_v29, %v3597_v42  ;;  %v1480_v41 = vpop.f32.mrb[49].mxu0  ;;  %v1721_v43 = vpop.f32.mrb[17].mxu1 }
 0x29d   : > { %v1481_v44 = vpop.f32.mrb[50].mxu0  ;;  %v1722_v46 = vpop.f32.mrb[18].mxu1 }
 0x29e   : > { %v3675_v33 = vadd.f32 %v1722_v46, %v3605_v40  ;;  %v1483_v45 = vpop.f32.mrb[51].mxu0  ;;  %v1724_v47 = vpop.f32.mrb[19].mxu1 }
 0x2a3   : > { %v1486_v49 = vpop.f32.mrb[52].mxu0  ;;  %v1727_v50 = vpop.f32.mrb[20].mxu1 }
 0x2a4   : > { %v3678_v37 = vadd.f32 %v1727_v50, %v3610_v48  ;;  %v1488_v52 = vpop.f32.mrb[53].mxu0  ;;  %v1729_v53 = vpop.f32.mrb[21].mxu1 }
 0x2a5   : > { %v1489_v55 = vpop.f32.mrb[54].mxu0  ;;  %v1730_v56 = vpop.f32.mrb[22].mxu1 }
 0x2a6   : > { %v3681_v42 = vadd.f32 %v1730_v56, %v3615_v51  ;;  %v1491_v57 = vpop.f32.mrb[55].mxu0  ;;  %v1732_v58 = vpop.f32.mrb[23].mxu1 }
 0x2ab   : > { %v1494_v60 = vpop.f32.mrb[56].mxu0  ;;  %v1735_v61 = vpop.f32.mrb[24].mxu1 }
 0x2ac   : > { %v3684_v40 = vadd.f32 %v1735_v61, %v3620_v54  ;;  %v1496_v63 = vpop.f32.mrb[57].mxu0  ;;  %v1737_v0 = vpop.f32.mrb[25].mxu1 }
 0x2ad   : > { %v1497_v2 = vpop.f32.mrb[58].mxu0  ;;  %v1738_v4 = vpop.f32.mrb[26].mxu1 }
 0x2ae   : > { %v3687_v48 = vadd.f32 %v1738_v4, %v3628_v59  ;;  %v1499_v5 = vpop.f32.mrb[59].mxu0  ;;  %v1740_v6 = vpop.f32.mrb[27].mxu1 }
 0x2b3   : > { %v1502_v9 = vpop.f32.mrb[60].mxu0  ;;  %v1743_v10 = vpop.f32.mrb[28].mxu1 }
 0x2b4   : > { %v3690_v51 = vadd.f32 %v1743_v10, %v3636_v1  ;;  %v1504_v12 = vpop.f32.mrb[61].mxu0  ;;  %v1745_v13 = vpop.f32.mrb[29].mxu1 }
 0x2b5   : > { %v1505_v15 = vpop.f32.mrb[62].mxu0  ;;  %v1746_v17 = vpop.f32.mrb[30].mxu1 }
 0x2b6   : > { %v3693_v54 = vadd.f32 %v1746_v17, %v3644_v8  ;;  %v1507_v18 = vpop.f32.mrb[63].mxu0  ;;  %v1748_v19 = vpop.f32.mrb[31].mxu1 }
 0x2bb   : > { %v1510_v21 = vpop.f32.mrb[64].mxu0  ;;  %v1751_v23 = vpop.f32.mrb[32].mxu1 }
 0x2bc   : > { %v3696_v59 = vadd.f32 %v1751_v23, %v3652_v14  ;;  %v1512_v24 = vpop.f32.mrb[65].mxu0  ;;  %v1753_v27 = vpop.f32.mrb[33].mxu1 }
 0x2bd   : > { %v1513_v28 = vpop.f32.mrb[66].mxu0  ;;  %v1754_v30 = vpop.f32.mrb[34].mxu1 }
 0x2be   : > { %v3699_v1 = vadd.f32 %v1754_v30, %v3660_v20  ;;  %v1515_v32 = vpop.f32.mrb[67].mxu0  ;;  %v1756_v35 = vpop.f32.mrb[35].mxu1 }
 0x2c3   : > { %v3701_v36 = vpop.f32.mrb[68].mxu0  ;;  %v1759_v8 = vpop.f32.mrb[36].mxu1 }
 0x2c4   : > { %v3703_v29 = vadd.f32 %v1759_v8, %v1470_v26  ;;  %v1520_v41 = vpop.f32.mrb[69].mxu0  ;;  %v1761_v43 = vpop.f32.mrb[37].mxu1 }
 0x2c5   : > { %v3705_v46 = vpop.f32.mrb[70].mxu0  ;;  %v1762_v14 = vpop.f32.mrb[38].mxu1 }
 0x2c6   : > { %v3707_v45 = vadd.f32 %v1762_v14, %v1473_v31  ;;  %v1523_v47 = vpop.f32.mrb[71].mxu0  ;;  %v1764_v50 = vpop.f32.mrb[39].mxu1 }
 0x2cb   : > { %v3709_v52 = vpop.f32.mrb[72].mxu0  ;;  %v1767_v20 = vpop.f32.mrb[40].mxu1 }
 0x2cc   : > { %v3711_v53 = vadd.f32 %v1767_v20, %v1478_v38  ;;  %v1528_v56 = vpop.f32.mrb[73].mxu0  ;;  %v1769_v57 = vpop.f32.mrb[41].mxu1 }
 0x2cd   : > { %v3713_v58 = vpop.f32.mrb[74].mxu0  ;;  %v1770_v26 = vpop.f32.mrb[42].mxu1 }
 0x2ce   : > { %v3715_v61 = vadd.f32 %v1770_v26, %v1481_v44  ;;  %v1531_v63 = vpop.f32.mrb[75].mxu0  ;;  %v1772_v0 = vpop.f32.mrb[43].mxu1 }
 0x2d3   : > { %v3717_v4 = vpop.f32.mrb[76].mxu0  ;;  %v1775_v31 = vpop.f32.mrb[44].mxu1 }
 0x2d4   : > { %v3719_v5 = vadd.f32 %v1775_v31, %v1486_v49  ;;  %v1536_v6 = vpop.f32.mrb[77].mxu0  ;;  %v1777_v10 = vpop.f32.mrb[45].mxu1 }
 0x2d5   : > { %v3721_v12 = vpop.f32.mrb[78].mxu0  ;;  %v1778_v38 = vpop.f32.mrb[46].mxu1 }
 0x2d6   : > { %v3723_v13 = vadd.f32 %v1778_v38, %v1489_v55  ;;  %v1539_v17 = vpop.f32.mrb[79].mxu0  ;;  %v1780_v18 = vpop.f32.mrb[47].mxu1 }
 0x2db   : > { %v3725_v19 = vpop.f32.mrb[80].mxu0  ;;  %v1783_v44 = vpop.f32.mrb[48].mxu1 }
 0x2dc   : > { %v3727_v23 = vadd.f32 %v1783_v44, %v1494_v60  ;;  %v1544_v24 = vpop.f32.mrb[81].mxu0  ;;  %v1785_v27 = vpop.f32.mrb[49].mxu1 }
 0x2dd   : > { %v3729_v30 = vpop.f32.mrb[82].mxu0  ;;  %v1786_v49 = vpop.f32.mrb[50].mxu1 }
 0x2de   : > { %v3731_v32 = vadd.f32 %v1786_v49, %v1497_v2  ;;  %v1547_v35 = vpop.f32.mrb[83].mxu0  ;;  %v1788_v8 = vpop.f32.mrb[51].mxu1 }
 0x2e3   : > { %v3733_v41 = vpop.f32.mrb[84].mxu0  ;;  %v1791_v55 = vpop.f32.mrb[52].mxu1 }
 0x2e4   : > { %v3735_v43 = vadd.f32 %v1791_v55, %v1502_v9  ;;  %v1552_v14 = vpop.f32.mrb[85].mxu0  ;;  %v1793_v47 = vpop.f32.mrb[53].mxu1 }
 0x2e5   : > { %v3737_v50 = vpop.f32.mrb[86].mxu0  ;;  %v1794_v60 = vpop.f32.mrb[54].mxu1 }
 0x2e6   : > { %v3739_v20 = vadd.f32 %v1794_v60, %v1505_v15  ;;  %v1555_v56 = vpop.f32.mrb[87].mxu0  ;;  %v1796_v57 = vpop.f32.mrb[55].mxu1  ;;  %v2914_v15 = vld [vmem:[%s4062_s3 + $0x4] ss:$8 sps:$4 sm:$0xff]  }
 0x2e7   : > { %2118 = vmatprep.mubr.bf16.mxu1 %v2914_v15 }
 0x2eb   : > { %v3741_v26 = vpop.f32.mrb[88].mxu0  ;;  %v1799_v2 = vpop.f32.mrb[56].mxu1 }
 0x2ec   : > { %v3743_v63 = vadd.f32 %v1799_v2, %v1510_v21  ;;  %v1560_v0 = vpop.f32.mrb[89].mxu0  ;;  %v1801_v31 = vpop.f32.mrb[57].mxu1 }
 0x2ed   : > { %v3745_v6 = vpop.f32.mrb[90].mxu0  ;;  %v1802_v9 = vpop.f32.mrb[58].mxu1  ;;  %v1930_v0 = vmul.f32 %v3623_v7, %v3623_v7 }
 0x2ee   : > { %v3747_v10 = vadd.f32 %v1802_v9, %v1513_v28  ;;  %v1563_v38 = vpop.f32.mrb[91].mxu0  ;;  %v1804_v17 = vpop.f32.mrb[59].mxu1 }
 0x2ef   : > { %v1931_v17 = vmul.f32 %v3634_v62, %v3634_v62  ;;  %v1932_v62 = vmul.f32 %v3639_v3, %v3639_v3 }
 0x2f3   : > { %v3752_v18 = vpop.f32.mrb[92].mxu0  ;;  %v1807_v44 = vpop.f32.mrb[60].mxu1 }
 0x2f4   : > { %v3755_v21 = vadd.f32 %v1807_v44, %v3701_v36  ;;  %v1568_v24 = vpop.f32.mrb[93].mxu0  ;;  %v1809_v27 = vpop.f32.mrb[61].mxu1 }
 0x2f5   : > { %v3757_v49 = vpop.f32.mrb[94].mxu0  ;;  %v1810_v35 = vpop.f32.mrb[62].mxu1 }
 0x2f6   : > { %v3760_v28 = vadd.f32 %v1810_v35, %v3705_v46  ;;  %v1571_v8 = vpop.f32.mrb[95].mxu0  ;;  %v1812_v55 = vpop.f32.mrb[63].mxu1 }
 0x2fb   : > { %v3762_v14 = vpop.f32.mrb[96].mxu0  ;;  %v1815_v47 = vpop.f32.mrb[64].mxu1 }
 0x2fc   : > { %v1816_v60 = vadd.f32 %v1815_v47, %v3709_v52  ;;  %v1576_v56 = vpop.f32.mrb[97].mxu0  ;;  %v1817_v57 = vpop.f32.mrb[65].mxu1 }
 0x2fd   : > { %v3765_v2 = vpop.f32.mrb[98].mxu0  ;;  %v1818_v36 = vpop.f32.mrb[66].mxu1 }
 0x2fe   : > { %v1962_v31 = vmul.f32 %v1816_v60, %v1816_v60  ;;  %v1819_v9 = vadd.f32 %v1818_v36, %v3713_v58  ;;  %v1579_v46 = vpop.f32.mrb[99].mxu0  ;;  %v1820_v38 = vpop.f32.mrb[67].mxu1 }
 0x300   : > { %v3772_v15 = vadd.f32 %v1962_v31, %v1930_v0  ;;  %v1963_v44 = vmul.f32 %v1819_v9, %v1819_v9  ;;  %v1933_v0 = vmul.f32 %v3650_v11, %v3650_v11  ;;  %v1934_v11 = vmul.f32 %v3655_v16, %v3655_v16 }
 0x302   : > { %v3774_v52 = vadd.f32 %v1963_v44, %v1931_v17 }
 0x303   : > { %v3776_v24 = vpop.f32.mrb[100].mxu0  ;;  %v1823_v27 = vpop.f32.mrb[68].mxu1 }
 0x304   : > { %v2032_v35 = vpack.c.bf16 %v3774_v52, %v3772_v15  ;;  %v1824_v7 = vadd.f32 %v1823_v27, %v3717_v4  ;;  %v1584_v8 = vpop.f32.mrb[101].mxu0  ;;  %v1825_v58 = vpop.f32.mrb[69].mxu1  ;;  %v1953_v52 = vmul.f32 %v3723_v13, %v3723_v13 }
 0x305   : > { %v3781_v55 = vpop.f32.mrb[102].mxu0  ;;  %v1826_v47 = vpop.f32.mrb[70].mxu1 }
 0x306   : > { %v1964_v60 = vmul.f32 %v1824_v7, %v1824_v7  ;;  %v1827_v56 = vadd.f32 %v1826_v47, %v3721_v12  ;;  %v1587_v57 = vpop.f32.mrb[103].mxu0  ;;  %v1828_v36 = vpop.f32.mrb[71].mxu1 }
 0x308   : > { %v3788_v31 = vadd.f32 %v1964_v60, %v1932_v62  ;;  %v1965_v9 = vmul.f32 %v1827_v56, %v1827_v56  ;;  %v1935_v60 = vmul.f32 %v3663_v22, %v3663_v22  ;;  %v1936_v22 = vmul.f32 %v3666_v25, %v3666_v25 }
 0x30a   : > { %v3790_v4 = vadd.f32 %v1965_v9, %v1933_v0 }
 0x30b   : > { %v3792_v46 = vpop.f32.mrb[104].mxu0  ;;  %v1831_v38 = vpop.f32.mrb[72].mxu1 }
 0x30c   : > { %v2033_v17 = vpack.c.bf16 %v3790_v4, %v3788_v31  ;;  %v1832_v3 = vadd.f32 %v1831_v38, %v3725_v19  ;;  %v1592_v44 = vpop.f32.mrb[105].mxu0  ;;  %v1833_v12 = vpop.f32.mrb[73].mxu1 }
 0x30d   : > { %v3797_v27 = vpop.f32.mrb[106].mxu0  ;;  %v1834_v7 = vpop.f32.mrb[74].mxu1 }
 0x30e   : > { %v1966_v8 = vmul.f32 %v1832_v3, %v1832_v3  ;;  %v1835_v58 = vadd.f32 %v1834_v7, %v3729_v30  ;;  %v1595_v47 = vpop.f32.mrb[107].mxu0  ;;  %v1836_v62 = vpop.f32.mrb[75].mxu1 }
 0x310   : > { %v3804_v56 = vadd.f32 %v1966_v8, %v1934_v11  ;;  %v1967_v57 = vmul.f32 %v1835_v58, %v1835_v58  ;;  %v1937_v58 = vmul.f32 %v3669_v34, %v3669_v34  ;;  %v1938_v34 = vmul.f32 %v3672_v39, %v3672_v39 }
 0x312   : > { %v3806_v19 = vadd.f32 %v1967_v57, %v1935_v60 }
 0x313   : > { %v3808_v36 = vpop.f32.mrb[108].mxu0  ;;  %v1839_v0 = vpop.f32.mrb[76].mxu1 }
 0x314   : > { %v1840_v16 = vadd.f32 %v1839_v0, %v3733_v41  ;;  %v1600_v38 = vpop.f32.mrb[109].mxu0  ;;  %v1841_v30 = vpop.f32.mrb[77].mxu1 }
 0x315   : > { %v3813_v3 = vpop.f32.mrb[110].mxu0  ;;  %v1842_v44 = vpop.f32.mrb[78].mxu1 }
 0x316   : > { %v1968_v12 = vmul.f32 %v1840_v16, %v1840_v16  ;;  %v1843_v7 = vadd.f32 %v1842_v44, %v3737_v50  ;;  %v1603_v11 = vpop.f32.mrb[111].mxu0  ;;  %v1844_v8 = vpop.f32.mrb[79].mxu1 }
 0x317   : > { %v1939_v11 = vmul.f32 %v3675_v33, %v3675_v33  ;;  %v1940_v33 = vmul.f32 %v3678_v37, %v3678_v37 }
 0x318   : > { %v3820_v47 = vadd.f32 %v1968_v12, %v1936_v22  ;;  %v1969_v62 = vmul.f32 %v1843_v7, %v1843_v7 }
 0x31a   : > { %v3822_v41 = vadd.f32 %v1969_v62, %v1937_v58 }
 0x31b   : > { %v3824_v60 = vpop.f32.mrb[112].mxu0  ;;  %v1847_v57 = vpop.f32.mrb[80].mxu1 }
 0x31c   : > { %v1848_v25 = vadd.f32 %v1847_v57, %v3741_v26  ;;  %v1608_v16 = vpop.f32.mrb[113].mxu0  ;;  %v1849_v50 = vpop.f32.mrb[81].mxu1 }
 0x31d   : > { %v3829_v38 = vpop.f32.mrb[114].mxu0  ;;  %v1850_v30 = vpop.f32.mrb[82].mxu1 }
 0x31e   : > { %v1970_v44 = vmul.f32 %v1848_v25, %v1848_v25  ;;  %v1851_v22 = vadd.f32 %v1850_v30, %v3745_v6  ;;  %v1611_v12 = vpop.f32.mrb[115].mxu0  ;;  %v1852_v7 = vpop.f32.mrb[83].mxu1 }
 0x31f   : > { %v1941_v7 = vmul.f32 %v3681_v42, %v3681_v42  ;;  %v1942_v42 = vmul.f32 %v3684_v40, %v3684_v40 }
 0x320   : > { %v3836_v8 = vadd.f32 %v1970_v44, %v1938_v34  ;;  %v1971_v58 = vmul.f32 %v1851_v22, %v1851_v22 }
 0x322   : > { %v3838_v26 = vadd.f32 %v1971_v58, %v1939_v11 }
 0x323   : > { %v3840_v62 = vpop.f32.mrb[116].mxu0  ;;  %v1855_v57 = vpop.f32.mrb[84].mxu1 }
 0x324   : > { %v1856_v39 = vadd.f32 %v1855_v57, %v3752_v18  ;;  %v1616_v25 = vpop.f32.mrb[117].mxu0  ;;  %v1857_v6 = vpop.f32.mrb[85].mxu1 }
 0x325   : > { %v3845_v50 = vpop.f32.mrb[118].mxu0  ;;  %v1858_v30 = vpop.f32.mrb[86].mxu1 }
 0x326   : > { %v1972_v34 = vmul.f32 %v1856_v39, %v1856_v39  ;;  %v1859_v44 = vadd.f32 %v1858_v30, %v3757_v49  ;;  %v1619_v22 = vpop.f32.mrb[119].mxu0  ;;  %v1860_v12 = vpop.f32.mrb[87].mxu1 }
 0x328   : > { %v3852_v11 = vadd.f32 %v1972_v34, %v1940_v33  ;;  %v1973_v58 = vmul.f32 %v1859_v44, %v1859_v44 }
 0x32a   : > { %v3854_v18 = vadd.f32 %v1973_v58, %v1941_v7  ;;  %v1943_v7 = vmul.f32 %v3687_v48, %v3687_v48 }
 0x32b   : > { %v3856_v57 = vpop.f32.mrb[120].mxu0  ;;  %v1863_v25 = vpop.f32.mrb[88].mxu1 }
 0x32c   : > { %v1864_v37 = vadd.f32 %v1863_v25, %v3762_v14  ;;  %v1624_v39 = vpop.f32.mrb[121].mxu0  ;;  %v1865_v49 = vpop.f32.mrb[89].mxu1 }
 0x32d   : > { %v3861_v30 = vpop.f32.mrb[122].mxu0  ;;  %v1866_v22 = vpop.f32.mrb[90].mxu1 }
 0x32e   : > { %v1974_v33 = vmul.f32 %v1864_v37, %v1864_v37  ;;  %v1867_v34 = vadd.f32 %v1866_v22, %v3765_v2  ;;  %v1627_v44 = vpop.f32.mrb[123].mxu0  ;;  %v1868_v12 = vpop.f32.mrb[91].mxu1  ;;  %v1944_v2 = vmul.f32 %v3690_v51, %v3690_v51 }
 0x32f   : > { %v1958_v12 = vmul.f32 %v3743_v63, %v3743_v63 }
 0x330   : > { %v2006_v58 = vadd.f32 %v1974_v33, %v1942_v42  ;;  %v1975_v6 = vmul.f32 %v1867_v34, %v1867_v34  ;;  %v1945_v33 = vmul.f32 %v3693_v54, %v3693_v54  ;;  %v1959_v54 = vmul.f32 %v3747_v10, %v3747_v10 }
 0x331   : > { %v1960_v10 = vmul.f32 %v3755_v21, %v3755_v21 }
 0x332   : > { %v2007_v16 = vadd.f32 %v1975_v6, %v1943_v7 }
 0x333   : > { %v3868_v14 = vpop.f32.mrb[124].mxu0  ;;  %v1871_v25 = vpop.f32.mrb[92].mxu1 }
 0x334   : > { %v1872_v39 = vadd.f32 %v1871_v25, %v3776_v24  ;;  %v1632_v49 = vpop.f32.mrb[125].mxu0  ;;  %v1873_v0 = vpop.f32.mrb[93].mxu1  ;;  %v2038_v9 = vpack.c.bf16 %v2007_v16, %v2006_v58 }
 0x335   : > { %v3871_v40 = vpop.f32.mrb[126].mxu0  ;;  %v1874_v37 = vpop.f32.mrb[94].mxu1 }
 0x336   : > { %v1976_v22 = vmul.f32 %v1872_v39, %v1872_v39  ;;  %v1875_v48 = vadd.f32 %v1874_v37, %v3781_v55  ;;  %v1635_v42 = vpop.f32.mrb[127].mxu0  ;;  %2561 = vmatprep.subr.bf16.mxu1 %v2038_v9  ;;  %v1876_v6 = vpop.f32.mrb[95].mxu1  ;;  %v1946_v9 = vmul.f32 %v3696_v59, %v3696_v59 }
 0x338   : > { %v2008_v34 = vadd.f32 %v1976_v22, %v1944_v2  ;;  %v1977_v24 = vmul.f32 %v1875_v48, %v1875_v48 }
 0x33a   : > { %v2009_v44 = vadd.f32 %v1977_v24, %v1945_v33 }
 0x33b   : > { %v1671_v0 = vpop.f32.mrb[0].mxu0  ;;  %v1879_v16 = vpop.f32.mrb[96].mxu1 }
 0x33c   : > { %v1926_v7 = vmul.f32 %v1671_v0, %v1671_v0  ;;  %v1880_v51 = vadd.f32 %v1879_v16, %v3792_v46  ;;  %v1673_v58 = vpop.f32.mrb[1].mxu0  ;;  %v1881_v25 = vpop.f32.mrb[97].mxu1  ;;  %v2039_v55 = vpack.c.bf16 %v2009_v44, %v2008_v34  ;;  %v1947_v46 = vmul.f32 %v3699_v1, %v3699_v1 }
 0x33d   : > { %v1674_v39 = vpop.f32.mrb[2].mxu0  ;;  %v1882_v49 = vpop.f32.mrb[98].mxu1  ;;  %v1948_v1 = vmul.f32 %v3703_v29, %v3703_v29  ;;  %v1961_v58 = vmul.f32 %v3760_v28, %v3760_v28 }
 0x33e   : > { %v1990_v37 = vadd.f32 %v1958_v12, %v1926_v7  ;;  %v1978_v2 = vmul.f32 %v1880_v51, %v1880_v51  ;;  %v1927_v22 = vmul.f32 %v1674_v39, %v1674_v39  ;;  %v1883_v48 = vadd.f32 %v1882_v49, %v3797_v27  ;;  %v1676_v63 = vpop.f32.mrb[3].mxu0  ;;  %v1884_v42 = vpop.f32.mrb[99].mxu1 }
 0x340   : > { %v2010_v6 = vadd.f32 %v1978_v2, %v1946_v9  ;;  %v1991_v33 = vadd.f32 %v1959_v54, %v1927_v22  ;;  %v1979_v34 = vmul.f32 %v1883_v48, %v1883_v48  ;;  %v1949_v2 = vmul.f32 %v3707_v45, %v3707_v45 }
 0x342   : > { %v2030_v24 = vpack.c.bf16 %v1991_v33, %v1990_v37  ;;  %v2011_v59 = vadd.f32 %v1979_v34, %v1947_v46 }
 0x343   : > { %v1679_v44 = vpop.f32.mrb[4].mxu0  ;;  %v1887_v0 = vpop.f32.mrb[100].mxu1 }
 0x344   : > { %v1928_v16 = vmul.f32 %v1679_v44, %v1679_v44  ;;  %v1888_v12 = vadd.f32 %v1887_v0, %v3808_v36  ;;  %v1681_v7 = vpop.f32.mrb[5].mxu0  ;;  %v1889_v27 = vpop.f32.mrb[101].mxu1  ;;  %2562 = vmatpush3.bf16.msra.mxu1 %v2030_v24  ;;  %v2040_v51 = vpack.c.bf16 %v2011_v59, %v2010_v6  ;;  %v1951_v59 = vmul.f32 %v3715_v61, %v3715_v61 }
 0x345   : > { %v1682_v25 = vpop.f32.mrb[6].mxu0  ;;  %v1890_v9 = vpop.f32.mrb[102].mxu1  ;;  %2563 = vmatprep.subr.bf16.mxu1 %v2039_v55  ;;  %v1952_v61 = vmul.f32 %v3719_v5, %v3719_v5 }
 0x346   : > { %v1992_v54 = vadd.f32 %v1960_v10, %v1928_v16  ;;  %v1980_v39 = vmul.f32 %v1888_v12, %v1888_v12  ;;  %v1929_v49 = vmul.f32 %v1682_v25, %v1682_v25  ;;  %v1891_v21 = vadd.f32 %v1890_v9, %v3813_v3  ;;  %v1684_v37 = vpop.f32.mrb[7].mxu0  ;;  %v1892_v36 = vpop.f32.mrb[103].mxu1 }
 0x347   : > { %v1950_v3 = vmul.f32 %v3711_v53, %v3711_v53 }
 0x348   : > { %v2012_v22 = vadd.f32 %v1980_v39, %v1948_v1  ;;  %v1993_v48 = vadd.f32 %v1961_v58, %v1929_v49  ;;  %v1981_v63 = vmul.f32 %v1891_v21, %v1891_v21 }
 0x34a   : > { %v2031_v29 = vpack.c.bf16 %v1993_v48, %v1992_v54  ;;  %v2013_v42 = vadd.f32 %v1981_v63, %v1949_v2  ;;  %v4065_v54 = vpack.c.bf16 %v3822_v41, %v3820_v47  ;;  %v1957_v41 = vmul.f32 %v3739_v20, %v3739_v20  ;;  %v2917_v20 = vld [vmem:[%s4062_s3 + $0x10] ss:$8 sps:$4 sm:$0xff]  }
 0x34b   : > { %v1895_v46 = vpop.f32.mrb[104].mxu1 }
 0x34c   : > { %v1896_v28 = vadd.f32 %v1895_v46, %v3824_v60  ;;  %v1897_v6 = vpop.f32.mrb[105].mxu1  ;;  %2564 = vmatpush3.bf16.msra.mxu1 %v2031_v29  ;;  %v2041_v55 = vpack.c.bf16 %v2013_v42, %v2012_v22  ;;  %v2923_v42 = vld [vmem:[%s4062_s3 + $0x30] ss:$8 sps:$4 sm:$0xff]   ;;  %v2197_v46 = vstv %s2180_s12 }
 0x34d   : > { %v1898_v33 = vpop.f32.mrb[106].mxu1  ;;  %2565 = vmatprep.subr.bf16.mxu1 %v2040_v51  ;;  %v4064_v51 = vpack.c.bf16 %v3806_v19, %v3804_v56  ;;  %v1955_v56 = vmul.f32 %v3731_v32, %v3731_v32  ;;  %v4066_v32 = vpack.c.bf16 %v3838_v26, %v3836_v8  ;;  %v2915_v8 = vld [vmem:[%s4062_s3 + $0x14] ss:$8 sps:$4 sm:$0xff]   ;;  %v2918_v26 = vld [vmem:[%s4062_s3 + $0x24] ss:$8 sps:$4 sm:$0xff]   ;;  %2924 = vrcp.f32 %v2197_v46 }
 0x34e   : > { %v1982_v34 = vmul.f32 %v1896_v28, %v1896_v28  ;;  %v1899_v24 = vadd.f32 %v1898_v33, %v3829_v38  ;;  %v1900_v45 = vpop.f32.mrb[107].mxu1  ;;  %v2250_v28 = vstv %s2557_s13 }
 0x34f   : > { %2926 = vrcp.f32 %v2250_v28 }
 0x350   : > { %v2014_v44 = vadd.f32 %v1982_v34, %v1950_v3  ;;  %v1983_v0 = vmul.f32 %v1899_v24, %v1899_v24  ;;  %2566 = vmatpush3.bf16.msra.mxu1 %v2032_v35 }
 0x351   : > { %2567 = vmatprep.subr.bf16.mxu1 %v2041_v55 }
 0x352   : > { %v2015_v60 = vadd.f32 %v1983_v0, %v1951_v59 }
 0x353   : > { %v1903_v10 = vpop.f32.mrb[108].mxu1 }
 0x354   : > { %v1904_v16 = vadd.f32 %v1903_v10, %v3840_v62  ;;  %v1905_v12 = vpop.f32.mrb[109].mxu1  ;;  %2568 = vmatpush3.bf16.msra.mxu1 %v2033_v17  ;;  %v2042_v53 = vpack.c.bf16 %v2015_v60, %v2014_v44  ;;  %v2168_v10 = vlaneseq }
 0x355   : > { %v1906_v38 = vpop.f32.mrb[110].mxu1 }
 0x356   : > { %v1984_v7 = vmul.f32 %v1904_v16, %v1904_v16  ;;  %v1907_v27 = vadd.f32 %v1906_v38, %v3845_v50  ;;  %2569 = vmatprep.subr.bf16.mxu1 %v2042_v53  ;;  %v1908_v15 = vpop.f32.mrb[111].mxu1  ;;  %v1954_v50 = vmul.f32 %v3727_v23, %v3727_v23 }
 0x357   : > { %v2925_v6 = vpop.eup %2924  ;;  %v2170_v15 = vstv %s3962_s11 }
 0x358   : > { %v2016_v35 = vadd.f32 %v1984_v7, %v1952_v61  ;;  %v1985_v62 = vmul.f32 %v1907_v27, %v1907_v27  ;;  %2570 = vmatpush3.bf16.msra.mxu1 %v4064_v51  ;;  %2702 = vpush %v2925_v6  ;;  %v2169_v27 = vand.u32 127, %v2168_v10 }
 0x359   : > { %v2927_v55 = vpop.eup %2926 }
 0x35a   : > { %v2017_v31 = vadd.f32 %v1985_v62, %v1953_v52  ;;  %2704 = vpush %v2927_v55  ;;  %vm3966_vm3 = vcmp.lt.s32.totalorder %v2169_v27, %v2170_v15 }
 0x35b   : > { %v1911_v4 = vpop.f32.mrb[112].mxu1 }
 0x35c   : > { %v1912_v17 = vadd.f32 %v1911_v4, %v3856_v57  ;;  %v1913_v1 = vpop.f32.mrb[113].mxu1  ;;  %v2043_v5 = vpack.c.bf16 %v2017_v31, %v2016_v35 }
 0x35d   : > { %v1914_v58 = vpop.f32.mrb[114].mxu1 }
 0x35e   : > { %v1986_v25 = vmul.f32 %v1912_v17, %v1912_v17  ;;  %v1915_v9 = vadd.f32 %v1914_v58, %v3861_v30  ;;  %2571 = vmatprep.subr.bf16.mxu1 %v2043_v5  ;;  %v1916_v13 = vpop.f32.mrb[115].mxu1  ;;  %v1956_v30 = vmul.f32 %v3735_v43, %v3735_v43  ;;  %v2912_v43 = vld [vmem:[%s4062_s3] ss:$8 sps:$4 sm:$0xff]  }
 0x35f   : > { %2572 = vmatpush3.bf16.msra.mxu1 %v4065_v54 }
 0x360   : > { %v2018_v19 = vadd.f32 %v1986_v25, %v1954_v50  ;;  %v1987_v57 = vmul.f32 %v1915_v9, %v1915_v9 }
 0x362   : > { %v2019_v39 = vadd.f32 %v1987_v57, %v1955_v56 }
 0x363   : > { %v1919_v49 = vpop.f32.mrb[116].mxu1 }
 0x364   : > { %v1920_v21 = vadd.f32 %v1919_v49, %v3868_v14  ;;  %v1921_v37 = vpop.f32.mrb[117].mxu1  ;;  %v2044_v23 = vpack.c.bf16 %v2019_v39, %v2018_v19 }
 0x365   : > { %v1922_v36 = vpop.f32.mrb[118].mxu1 }
 0x366   : > { %v1988_v2 = vmul.f32 %v1920_v21, %v1920_v21  ;;  %v1923_v22 = vadd.f32 %v1922_v36, %v3871_v40  ;;  %2573 = vmatprep.subr.bf16.mxu1 %v2044_v23  ;;  %v1924_v47 = vpop.f32.mrb[119].mxu1  ;;  %v4067_v40 = vpack.c.bf16 %v3854_v18, %v3852_v11  ;;  %v2920_v11 = vld [vmem:[%s4062_s3 + $0x20] ss:$8 sps:$4 sm:$0xff]   ;;  %v2921_v18 = vld [vmem:[%s4062_s3 + $0x34] ss:$8 sps:$4 sm:$0xff]  }
 0x367   : > { %2574 = vmatpush3.bf16.msra.mxu1 %v4066_v32 }
 0x368   : > { %v2020_v48 = vadd.f32 %v1988_v2, %v1956_v30  ;;  %v1989_v14 = vmul.f32 %v1923_v22, %v1923_v22 }
 0x36a   : > { %v2021_v63 = vadd.f32 %v1989_v14, %v1957_v41 }
 0x36c   : > { %v2045_v29 = vpack.c.bf16 %v2021_v63, %v2020_v48 }
 0x36e   : > { %2575 = vmatprep.subr.bf16.mxu1 %v2045_v29 }
 0x36f   : > { %2576 = vmatpush3.bf16.msra.mxu1 %v4067_v40 }
 0x372   : > { %2119 = vmatmul.mubr.bf16.vlgmr.msra.gmra.mrb[120].mxu1 %v2912_v43 }
 0x373   : > { %2126 = vmatprep.mubr.bf16.mxu1 %v2915_v8 }
 0x37a   : > { %2127 = vmatmul.mubr.bf16.gmra.mrb[124].mxu1 %v2917_v20 }
 0x37b   : > { %2134 = vmatprep.mubr.bf16.mxu1 %v2918_v26 }
 0x382   : > { %2135 = vmatmul.mubr.bf16.gmra.mrb[128].mxu1 %v2920_v11 }
 0x383   : > { %2142 = vmatprep.mubr.bf16.mxu1 %v2921_v18 }
 0x389   : > { %s2703_s0 = spop %2702 }
 0x38a   : > { %2143 = vmatmul.mubr.bf16.gmra.mrb[132].mxu1 %v2923_v42  ;;  %v2200_v46 = vstv %s2703_s0 }
 0x38b   : > { %s2705_s14 = spop %2704 }
 0x445   : > { %v2577_v33 = vpop.f32.mrb[120].mxu1 }
 0x446   : > { %v2578_v3 = vpop.f32.mrb[121].mxu1 }
 0x447   : > { %v2579_v34 = vadd.f32 %v2578_v3, %v2577_v33  ;;  %v2580_v24 = vpop.f32.mrb[122].mxu1 }
 0x448   : > { %v2581_v45 = vpop.f32.mrb[123].mxu1 }
 0x449   : > { %v2121_v59 = vadd.f32 5.9604645e-08, %v2579_v34  ;;  %v2582_v44 = vadd.f32 %v2581_v45, %v2580_v24 }
 0x44b   : > { %2928 = vlog2.f32 %v2121_v59  ;;  %v2124_v0 = vadd.f32 5.9604645e-08, %v2582_v44 }
 0x44d   : > { %2930 = vlog2.f32 %v2124_v0  ;;  %v2583_v60 = vpop.f32.mrb[124].mxu1 }
 0x44e   : > { %v2584_v16 = vpop.f32.mrb[125].mxu1 }
 0x44f   : > { %v2585_v12 = vadd.f32 %v2584_v16, %v2583_v60  ;;  %v2586_v53 = vpop.f32.mrb[126].mxu1 }
 0x450   : > { %v2587_v38 = vpop.f32.mrb[127].mxu1 }
 0x451   : > { %v2129_v61 = vadd.f32 5.9604645e-08, %v2585_v12  ;;  %v2588_v7 = vadd.f32 %v2587_v38, %v2586_v53 }
 0x453   : > { %2932 = vlog2.f32 %v2129_v61  ;;  %v2132_v52 = vadd.f32 5.9604645e-08, %v2588_v7 }
 0x455   : > { %v2929_v35 = vpop.eup %2928  ;;  %2934 = vlog2.f32 %v2132_v52  ;;  %v2589_v62 = vpop.f32.mrb[128].mxu1 }
 0x456   : > { %v2590_v31 = vpop.f32.mrb[129].mxu1  ;;  %v2152_v4 = vmul.f32 0.6931472, %v2929_v35 }
 0x457   : > { %v2931_v17 = vpop.eup %2930  ;;  %v2591_v1 = vadd.f32 %v2590_v31, %v2589_v62  ;;  %v2592_v5 = vpop.f32.mrb[130].mxu1 }
 0x458   : > { %v2593_v58 = vpop.f32.mrb[131].mxu1  ;;  %v2172_v50 = vsel %vm3966_vm3, %v2152_v4, 0.0  ;;  %v2154_v25 = vmul.f32 0.6931472, %v2931_v17 }
 0x459   : > { %v2137_v9 = vadd.f32 5.9604645e-08, %v2591_v1  ;;  %v2594_v13 = vadd.f32 %v2593_v58, %v2592_v5  ;;  %2181 = vadd.xlane.f32.xlu0 %v2172_v50 }
 0x45a   : > { %v2173_v54 = vsel %vm3966_vm3, %v2154_v25, 0.0 }
 0x45b   : > { %2936 = vlog2.f32 %v2137_v9  ;;  %v2140_v56 = vadd.f32 5.9604645e-08, %v2594_v13  ;;  %2183 = vadd.xlane.f32.xlu1 %v2173_v54 }
 0x45d   : > { %v2933_v19 = vpop.eup %2932  ;;  %2938 = vlog2.f32 %v2140_v56  ;;  %v2595_v57 = vpop.f32.mrb[132].mxu1 }
 0x45e   : > { %v2596_v39 = vpop.f32.mrb[133].mxu1  ;;  %v2156_v49 = vmul.f32 0.6931472, %v2933_v19 }
 0x45f   : > { %v2935_v21 = vpop.eup %2934  ;;  %v2597_v37 = vadd.f32 %v2596_v39, %v2595_v57  ;;  %v2598_v23 = vpop.f32.mrb[134].mxu1 }
 0x460   : > { %v2599_v36 = vpop.f32.mrb[135].mxu1  ;;  %v2174_v30 = vsel %vm3966_vm3, %v2156_v49, 0.0  ;;  %v2158_v2 = vmul.f32 0.6931472, %v2935_v21  ;;  %v2253_v21 = vstv %s2705_s14 }
 0x461   : > { %v2145_v22 = vadd.f32 5.9604645e-08, %v2597_v37  ;;  %v2600_v47 = vadd.f32 %v2599_v36, %v2598_v23  ;;  %2185 = vadd.xlane.f32.xlu0 %v2174_v30 }
 0x462   : > { %v2175_v41 = vsel %vm3966_vm3, %v2158_v2, 0.0 }
 0x463   : > { %2940 = vlog2.f32 %v2145_v22  ;;  %v2148_v32 = vadd.f32 5.9604645e-08, %v2600_v47 }
 0x465   : > { %v2937_v48 = vpop.eup %2936  ;;  %2942 = vlog2.f32 %v2148_v32  ;;  %2187 = vadd.xlane.f32.xlu0 %v2175_v41 }
 0x466   : > { %v2160_v14 = vmul.f32 0.6931472, %v2937_v48 }
 0x467   : > { %v2939_v63 = vpop.eup %2938 }
 0x468   : > { %v2176_v29 = vsel %vm3966_vm3, %v2160_v14, 0.0  ;;  %v2162_v43 = vmul.f32 0.6931472, %v2939_v63 }
 0x469   : > { %2189 = vadd.xlane.f32.xlu1 %v2176_v29 }
 0x46a   : > { %v2177_v40 = vsel %vm3966_vm3, %v2162_v43, 0.0 }
 0x46b   : > { %2191 = vadd.xlane.f32.xlu0 %v2177_v40 }
 0x46d   : > { %v2941_v8 = vpop.eup %2940 }
 0x46e   : > { %v2164_v20 = vmul.f32 0.6931472, %v2941_v8 }
 0x46f   : > { %v2943_v26 = vpop.eup %2942 }
 0x470   : > { %v2178_v11 = vsel %vm3966_vm3, %v2164_v20, 0.0  ;;  %v2166_v18 = vmul.f32 0.6931472, %v2943_v26 }
 0x471   : > { %2193 = vadd.xlane.f32.xlu1 %v2178_v11 }
 0x472   : > { %v2179_v42 = vsel %vm3966_vm3, %v2166_v18, 0.0 }
 0x473   : > { %2195 = vadd.xlane.f32.xlu0 %v2179_v42 }
 0x4e6   : > { %v2182_v28 = vpop.xlane.xlu0 %2181 }
 0x4e7   : > { %v2201_v6 = vmul.f32 %v2200_v46, %v2182_v28 }
 0x4e8   : > { %v2184_v55 = vpop.xlane.xlu1 %2183 }
 0x4e9   : > { %v2209_v33 = vsub.f32 %v2172_v50, %v2201_v6  ;;  %v2202_v3 = vmul.f32 %v2200_v46, %v2184_v55 }
 0x4eb   : > { %v2210_v34 = vsub.f32 %v2173_v54, %v2202_v3  ;;  %v3988_v24 = vsel %vm3966_vm3, %v2209_v33, 0.0 }
 0x4ec   : > { %v2225_v45 = vmul.f32 %v3988_v24, %v3988_v24 }
 0x4ed   : > { %v3994_v59 = vsel %vm3966_vm3, %v2210_v34, 0.0 }
 0x4ee   : > { %2233 = vadd.xlane.f32.xlu1 %v2225_v45  ;;  %v2186_v44 = vpop.xlane.xlu0 %2185  ;;  %v2226_v0 = vmul.f32 %v3994_v59, %v3994_v59 }
 0x4ef   : > { %v2203_v60 = vmul.f32 %v2200_v46, %v2186_v44 }
 0x4f0   : > { %2235 = vadd.xlane.f32.xlu0 %v2226_v0 }
 0x4f1   : > { %v2211_v10 = vsub.f32 %v2174_v30, %v2203_v60 }
 0x4f2   : > { %v2188_v16 = vpop.xlane.xlu0 %2187 }
 0x4f3   : > { %v2204_v12 = vmul.f32 %v2200_v46, %v2188_v16  ;;  %v4000_v53 = vsel %vm3966_vm3, %v2211_v10, 0.0 }
 0x4f4   : > { %v2227_v38 = vmul.f32 %v4000_v53, %v4000_v53 }
 0x4f5   : > { %v2212_v61 = vsub.f32 %v2175_v41, %v2204_v12 }
 0x4f6   : > { %v2190_v7 = vpop.xlane.xlu1 %2189  ;;  %2237 = vadd.xlane.f32.xlu1 %v2227_v38 }
 0x4f7   : > { %v4006_v27 = vsel %vm3966_vm3, %v2212_v61, 0.0  ;;  %v2205_v15 = vmul.f32 %v2200_v46, %v2190_v7 }
 0x4f8   : > { %v2192_v52 = vpop.xlane.xlu0 %2191  ;;  %v2228_v35 = vmul.f32 %v4006_v27, %v4006_v27 }
 0x4f9   : > { %v2213_v62 = vsub.f32 %v2176_v29, %v2205_v15  ;;  %v2206_v31 = vmul.f32 %v2200_v46, %v2192_v52 }
 0x4fa   : > { %2239 = vadd.xlane.f32.xlu0 %v2228_v35 }
 0x4fb   : > { %v2214_v4 = vsub.f32 %v2177_v40, %v2206_v31  ;;  %v4012_v17 = vsel %vm3966_vm3, %v2213_v62, 0.0 }
 0x4fc   : > { %v2229_v1 = vmul.f32 %v4012_v17, %v4012_v17 }
 0x4fd   : > { %v4018_v5 = vsel %vm3966_vm3, %v2214_v4, 0.0 }
 0x4fe   : > { %v2194_v58 = vpop.xlane.xlu1 %2193  ;;  %2241 = vadd.xlane.f32.xlu1 %v2229_v1  ;;  %v2230_v50 = vmul.f32 %v4018_v5, %v4018_v5 }
 0x4ff   : > { %v2207_v25 = vmul.f32 %v2200_v46, %v2194_v58 }
 0x500   : > { %2243 = vadd.xlane.f32.xlu0 %v2230_v50  ;;  %v2196_v9 = vpop.xlane.xlu0 %2195 }
 0x501   : > { %v2215_v13 = vsub.f32 %v2178_v11, %v2207_v25  ;;  %v2208_v54 = vmul.f32 %v2200_v46, %v2196_v9 }
 0x503   : > { %v2216_v56 = vsub.f32 %v2179_v42, %v2208_v54  ;;  %v4024_v19 = vsel %vm3966_vm3, %v2215_v13, 0.0 }
 0x504   : > { %v2231_v57 = vmul.f32 %v4024_v19, %v4024_v19 }
 0x505   : > { %v4030_v39 = vsel %vm3966_vm3, %v2216_v56, 0.0 }
 0x506   : > { %2245 = vadd.xlane.f32.xlu1 %v2231_v57  ;;  %v2232_v49 = vmul.f32 %v4030_v39, %v4030_v39 }
 0x508   : > { %2247 = vadd.xlane.f32.xlu0 %v2232_v49 }
 0x57b   : > { %v2234_v37 = vpop.xlane.xlu1 %2233 }
 0x57c   : > { %v2254_v23 = vmul.f32 %v2253_v21, %v2234_v37 }
 0x57d   : > { %v2236_v36 = vpop.xlane.xlu0 %2235 }
 0x57e   : > { %v2262_v30 = vmax.f32 %v2254_v23, 5.9604645e-08  ;;  %v2255_v2 = vmul.f32 %v2253_v21, %v2236_v36 }
 0x580   : > { %2944 = vrsqrt.f32 %v2262_v30  ;;  %v2263_v22 = vmax.f32 %v2255_v2, 5.9604645e-08  ;;  %vm2272_vm4 = vcmp.eq.f32.partialorder %v2262_v30, inf  ;;  %v2275_v40 = vand.u32 2147483648, %v2262_v30 }
 0x581   : > { %vm2274_vm5 = vcmp.eq.f32.partialorder %v2262_v30, 0.0 }
 0x582   : > { %2946 = vrsqrt.f32 %v2263_v22  ;;  %vm2279_vm6 = vcmp.eq.f32.partialorder %v2263_v22, inf  ;;  %v2282_v6 = vand.u32 2147483648, %v2263_v22  ;;  %vm2281_vm7 = vcmp.eq.f32.partialorder %v2263_v22, 0.0 }
 0x583   : > { %v2238_v47 = vpop.xlane.xlu1 %2237 }
 0x584   : > { %v2256_v32 = vmul.f32 %v2253_v21, %v2238_v47 }
 0x586   : > { %v2264_v51 = vmax.f32 %v2256_v32, 5.9604645e-08 }
 0x587   : > { %v2240_v41 = vpop.xlane.xlu0 %2239 }
 0x588   : > { %2948 = vrsqrt.f32 %v2264_v51  ;;  %v2257_v48 = vmul.f32 %v2253_v21, %v2240_v41  ;;  %vm2286_vm8 = vcmp.eq.f32.partialorder %v2264_v51, inf  ;;  %v2289_v10 = vand.u32 2147483648, %v2264_v51 }
 0x589   : > { %vm2288_vm9 = vcmp.eq.f32.partialorder %v2264_v51, 0.0 }
 0x58a   : > { %v2945_v14 = vpop.eup %2944  ;;  %v2265_v29 = vmax.f32 %v2257_v48, 5.9604645e-08 }
 0x58b   : > { %v2271_v63 = vmul.f32 %v2945_v14, %v2262_v30  ;;  %v2242_v43 = vpop.xlane.xlu1 %2241 }
 0x58c   : > { %v2258_v8 = vmul.f32 %v2253_v21, %v2242_v43  ;;  %v2947_v20 = vpop.eup %2946  ;;  %2950 = vrsqrt.f32 %v2265_v29  ;;  %vm2293_vm10 = vcmp.eq.f32.partialorder %v2265_v29, inf  ;;  %v2296_v31 = vand.u32 2147483648, %v2265_v29 }
 0x58d   : > { %v2273_v26 = vsel %vm2272_vm4, %v2262_v30, %v2271_v63  ;;  %v2244_v11 = vpop.xlane.xlu0 %2243  ;;  %v2278_v42 = vmul.f32 %v2947_v20, %v2263_v22  ;;  %vm2295_vm11 = vcmp.eq.f32.partialorder %v2265_v29, 0.0 }
 0x58e   : > { %v2276_v18 = vsel %vm2274_vm5, %v2275_v40, %v2273_v26  ;;  %v2266_v46 = vmax.f32 %v2258_v8, 5.9604645e-08  ;;  %v2259_v55 = vmul.f32 %v2253_v21, %v2244_v11 }
 0x58f   : > { %v2326_v28 = vadd.f32 1e-05, %v2276_v18  ;;  %v2280_v33 = vsel %vm2279_vm6, %v2263_v22, %v2278_v42 }
 0x590   : > { %2952 = vrsqrt.f32 %v2266_v46  ;;  %v2283_v3 = vsel %vm2281_vm7, %v2282_v6, %v2280_v33  ;;  %v2267_v34 = vmax.f32 %v2259_v55, 5.9604645e-08  ;;  %vm2300_vm12 = vcmp.eq.f32.partialorder %v2266_v46, inf }
 0x591   : > { %2954 = vrcp.f32 %v2326_v28  ;;  %v2327_v44 = vadd.f32 1e-05, %v2283_v3  ;;  %v2303_v56 = vand.u32 2147483648, %v2266_v46  ;;  %vm2302_vm13 = vcmp.eq.f32.partialorder %v2266_v46, 0.0 }
 0x592   : > { %v2949_v45 = vpop.eup %2948  ;;  %2956 = vrsqrt.f32 %v2267_v34  ;;  %vm2307_vm14 = vcmp.eq.f32.partialorder %v2267_v34, inf  ;;  %v2310_v2 = vand.u32 2147483648, %v2267_v34  ;;  %vm2309_vm15 = vcmp.eq.f32.partialorder %v2267_v34, 0.0 }
 0x593   : > { %v2285_v0 = vmul.f32 %v2949_v45, %v2264_v51  ;;  %v2246_v60 = vpop.xlane.xlu1 %2245  ;;  %2958 = vrcp.f32 %v2327_v44 }
 0x594   : > { %v2260_v16 = vmul.f32 %v2253_v21, %v2246_v60 }
 0x595   : > { %v2287_v12 = vsel %vm2286_vm8, %v2264_v51, %v2285_v0  ;;  %v2248_v38 = vpop.xlane.xlu0 %2247 }
 0x596   : > { %v2290_v61 = vsel %vm2288_vm9, %v2289_v10, %v2287_v12  ;;  %v2268_v7 = vmax.f32 %v2260_v16, 5.9604645e-08  ;;  %v2261_v15 = vmul.f32 %v2253_v21, %v2248_v38  ;;  %v2951_v52 = vpop.eup %2950 }
 0x597   : > { %v2328_v35 = vadd.f32 1e-05, %v2290_v61  ;;  %v2292_v62 = vmul.f32 %v2951_v52, %v2265_v29 }
 0x598   : > { %2960 = vrsqrt.f32 %v2268_v7  ;;  %v2269_v4 = vmax.f32 %v2261_v15, 5.9604645e-08  ;;  %vm2314_vm0 = vcmp.eq.f32.partialorder %v2268_v7, inf  ;;  %v2317_v14 = vand.u32 2147483648, %v2268_v7 }
 0x599   : > { %2962 = vrcp.f32 %v2328_v35  ;;  %v2294_v58 = vsel %vm2293_vm10, %v2265_v29, %v2292_v62  ;;  %vm2316_vm1 = vcmp.eq.f32.partialorder %v2268_v7, 0.0 }
 0x59a   : > { %v2953_v1 = vpop.eup %2952  ;;  %v2297_v25 = vsel %vm2295_vm11, %v2296_v31, %v2294_v58  ;;  %2964 = vrsqrt.f32 %v2269_v4  ;;  %vm2321_vm2 = vcmp.eq.f32.partialorder %v2269_v4, inf  ;;  %v2324_v8 = vand.u32 2147483648, %v2269_v4 }
 0x59b   : > { %v2955_v50 = vpop.eup %2954  ;;  %v2299_v9 = vmul.f32 %v2953_v1, %v2266_v46  ;;  %v2329_v54 = vadd.f32 1e-05, %v2297_v25  ;;  %vm2323_vm3 = vcmp.eq.f32.partialorder %v2269_v4, 0.0 }
 0x59c   : > { %v2342_v13 = vmul.f32 %v2955_v50, %v3988_v24  ;;  %v2957_v57 = vpop.eup %2956 }
 0x59d   : > { %v2301_v49 = vsel %vm2300_vm12, %v2266_v46, %v2299_v9  ;;  %v2959_v21 = vpop.eup %2958  ;;  %2966 = vrcp.f32 %v2329_v54  ;;  %v2306_v23 = vmul.f32 %v2957_v57, %v2267_v34 }
 0x59e   : > { %2350 = vst [vmem:[%s4038_s18] sm:$0xff] %v2342_v13  ;;  %v2304_v37 = vsel %vm2302_vm13, %v2303_v56, %v2301_v49  ;;  %v2343_v36 = vmul.f32 %v2959_v21, %v3994_v59 }
 0x59f   : > { %v2330_v30 = vadd.f32 1e-05, %v2304_v37  ;;  %v2308_v22 = vsel %vm2307_vm14, %v2267_v34, %v2306_v23 }
 0x5a0   : > { %2351 = vst [vmem:[%s4038_s18 + $0x8] sm:$0xff] %v2343_v36  ;;  %v2311_v24 = vsel %vm2309_vm15, %v2310_v2, %v2308_v22 }
 0x5a1   : > { %2968 = vrcp.f32 %v2330_v30  ;;  %v2331_v32 = vadd.f32 1e-05, %v2311_v24 }
 0x5a2   : > { %v2961_v47 = vpop.eup %2960 }
 0x5a3   : > { %v2963_v51 = vpop.eup %2962  ;;  %v2313_v41 = vmul.f32 %v2961_v47, %v2268_v7  ;;  %2970 = vrcp.f32 %v2331_v32 }
 0x5a4   : > { %v2344_v48 = vmul.f32 %v2963_v51, %v4000_v53  ;;  %v2965_v63 = vpop.eup %2964 }
 0x5a5   : > { %v2315_v59 = vsel %vm2314_vm0, %v2268_v7, %v2313_v41  ;;  %v2320_v43 = vmul.f32 %v2965_v63, %v2269_v4 }
 0x5a6   : > { %2352 = vst [vmem:[%s4038_s18 + $0x10] sm:$0xff] %v2344_v48  ;;  %v2318_v29 = vsel %vm2316_vm1, %v2317_v14, %v2315_v59 }
 0x5a7   : > { %v2332_v40 = vadd.f32 1e-05, %v2318_v29  ;;  %v2967_v20 = vpop.eup %2966  ;;  %v2322_v26 = vsel %vm2321_vm2, %v2269_v4, %v2320_v43 }
 0x5a8   : > { %v2345_v53 = vmul.f32 %v2967_v20, %v4006_v27  ;;  %v2325_v11 = vsel %vm2323_vm3, %v2324_v8, %v2322_v26 }
 0x5a9   : > { %2972 = vrcp.f32 %v2332_v40  ;;  %v2333_v18 = vadd.f32 1e-05, %v2325_v11 }
 0x5aa   : > { %2353 = vst [vmem:[%s4038_s18 + $0x18] sm:$0xff] %v2345_v53 }
 0x5ab   : > { %v2969_v42 = vpop.eup %2968  ;;  %2974 = vrcp.f32 %v2333_v18 }
 0x5ac   : > { %v2346_v46 = vmul.f32 %v2969_v42, %v4012_v17 }
 0x5ad   : > { %v2971_v28 = vpop.eup %2970 }
 0x5ae   : > { %2354 = vst [vmem:[%s4038_s18 + $0x20] sm:$0xff] %v2346_v46  ;;  %v2347_v6 = vmul.f32 %v2971_v28, %v4018_v5 }
 0x5b0   : > { %2355 = vst [vmem:[%s4038_s18 + $0x28] sm:$0xff] %v2347_v6 }
 0x5b3   : > { %v2973_v55 = vpop.eup %2972 }
 0x5b4   : > { %v2348_v33 = vmul.f32 %v2973_v55, %v4024_v19 }
 0x5b5   : > { %v2975_v3 = vpop.eup %2974 }
 0x5b6   : > { %2356 = vst [vmem:[%s4038_s18 + $0x30] sm:$0xff] %v2348_v33  ;;  %v2349_v27 = vmul.f32 %v2975_v3, %v4030_v39 }
 0x5b8   : > { %2357 = vst [vmem:[%s4038_s18 + $0x38] sm:$0xff] %v2349_v27 }
 0x5b9 PF: > { %s20_s20 = sadd.s32 1, %s2996_s20  }
 0x5ba   : > { %p17_p9 = scmp.ge.s32.totalorder %s20_s20, 4  }
 0x5bc   :  { %19 = sbr.rel (!%p17_p9) target bundleno = 16 (0x10), region = 62 }

</bundles_post_ra>
